<compile_context>
chip_gen: v5e
topology: v5e:2x2
jax: 0.10.0
libtpu: 0.0.40
codegen_flags: <defaults>
</compile_context>

<pallas_src>
import functools
import math

import jax
import jax.numpy as jnp
from jax import lax
from jax.experimental import pallas as pl
from jax.experimental.pallas import tpu as pltpu


# ----------------------------------------------------------------------------
# generation-aware defaults
#   v5e/v6e: 128 MiB VMEM -> 512-row tiles, raise scoped VMEM to 64 MiB
#   v7x    :  64 MiB VMEM -> 256-row tiles, keep scoped VMEM at 32 MiB
# ----------------------------------------------------------------------------
def _tpu_vmem_bytes():
    try:
        return int(pltpu.get_tpu_info().vmem_capacity_bytes)
    except Exception:
        return 128 * 1024 * 1024


_VMEM_BYTES = _tpu_vmem_bytes()
_BLOCK_ROWS = 256 if _VMEM_BYTES <= 64 * 1024 * 1024 else 512
_VMEM_LIMIT = min(_VMEM_BYTES // 2, 64 * 1024 * 1024)


def _cparams(*semantics):
    return pltpu.CompilerParams(dimension_semantics=semantics,
                                vmem_limit_bytes=_VMEM_LIMIT)


def _row_tile(m, target=None):
    """Largest row tile <= target that divides m (falls back to full m)."""
    if target is None:
        target = _BLOCK_ROWS
    if m <= target:
        return m
    t = target
    while t >= 8 and m % t != 0:
        t //= 2
    return t if (t >= 8 and m % t == 0) else m


def _head_group(num_heads, head_dim):
    """Heads per attention grid step: smallest divisor of num_heads whose packed
    ctx width (hg*dh) is a multiple of 128 lanes (legal, lane-dense block);
    otherwise all heads (full-dim block, legal by equality)."""
    for g in range(1, num_heads):
        if num_heads % g == 0 and (g * head_dim) % 128 == 0:
            return g
    return num_heads


def _resident_spec(shape, index_map):
    """Spec for operands whose block index never changes (weights / LN params).
    Large blocks are single-buffered (double-buffering a constant-index block
    buys no overlap but doubles its VMEM -- matters on v7x's 64 MiB); tiny
    blocks, and Pallas versions without per-spec pipeline_mode, keep the
    plain spec."""
    if math.prod(shape) >= 128 * 128 and hasattr(pl, "Buffered"):
        try:
            return pl.BlockSpec(shape, index_map, pipeline_mode=pl.Buffered(1))
        except TypeError:
            pass
    return pl.BlockSpec(shape, index_map)


def _gelu(x):
    # exact (erf) GELU, matches HF BERT "gelu"; f32 math.
    return 0.5 * x * (1.0 + lax.erf(x * (1.0 / math.sqrt(2.0))))


# ----------------------------------------------------------------------------
# Pallas kernels
# ----------------------------------------------------------------------------
def _linear_kernel(x_ref, w_ref, b_ref, o_ref, *, activation):
    # o = act(x @ w + b); bf16 operands, f32 MXU accumulation.
    y = jnp.dot(x_ref[...].astype(jnp.bfloat16), w_ref[...],
                preferred_element_type=jnp.float32)
    y = y + b_ref[...]
    if activation == "gelu":
        y = _gelu(y)
    elif activation == "tanh":
        y = jnp.tanh(y)
    o_ref[...] = y.astype(o_ref.dtype)


def linear(x, w, b, activation=None, out_dtype=jnp.float32, block_rows=None):
    M, K = x.shape
    Kw, N = w.shape
    tm = _row_tile(M, block_rows)
    return pl.pallas_call(
        functools.partial(_linear_kernel, activation=activation),
        out_shape=jax.ShapeDtypeStruct((M, N), out_dtype),
        grid=(M // tm,),
        in_specs=[
            pl.BlockSpec((tm, K), lambda i: (i, 0)),
            _resident_spec((Kw, N), lambda i: (0, 0)),
            _resident_spec((1, N), lambda i: (0, 0)),
        ],
        out_specs=pl.BlockSpec((tm, N), lambda i: (i, 0)),
        compiler_params=_cparams("parallel"),
    )(x, w, b.reshape(1, N))


def _linear_add_ln_kernel(x_ref, w_ref, b_ref, r_ref, g_ref, bt_ref, o_ref, *, eps):
    # o = LayerNorm(x @ w + b + residual); LN math in f32, store in o_ref dtype.
    y = jnp.dot(x_ref[...].astype(jnp.bfloat16), w_ref[...],
                preferred_element_type=jnp.float32)
    h = y + b_ref[...] + r_ref[...].astype(jnp.float32)
    mean = jnp.mean(h, axis=-1, keepdims=True)
    var = jnp.mean((h - mean) ** 2, axis=-1, keepdims=True)
    o_ref[...] = (((h - mean) * lax.rsqrt(var + eps)) * g_ref[...]
                  + bt_ref[...]).astype(o_ref.dtype)


def linear_add_layernorm(x, w, b, residual, gamma, beta, eps=1e-12,
                         out_dtype=jnp.bfloat16, block_rows=None):
    M, K = x.shape
    Kw, N = w.shape
    tm = _row_tile(M, block_rows)
    return pl.pallas_call(
        functools.partial(_linear_add_ln_kernel, eps=eps),
        out_shape=jax.ShapeDtypeStruct((M, N), out_dtype),
        grid=(M // tm,),
        in_specs=[
            pl.BlockSpec((tm, K), lambda i: (i, 0)),
            _resident_spec((Kw, N), lambda i: (0, 0)),
            _resident_spec((1, N), lambda i: (0, 0)),
            pl.BlockSpec((tm, N), lambda i: (i, 0)),
            _resident_spec((1, N), lambda i: (0, 0)),
            _resident_spec((1, N), lambda i: (0, 0)),
        ],
        out_specs=pl.BlockSpec((tm, N), lambda i: (i, 0)),
        compiler_params=_cparams("parallel"),
    )(x, w, b.reshape(1, N), residual, gamma.reshape(1, N), beta.reshape(1, N))


def _ffn_kernel(x_ref, wi_ref, bi_ref, wo_ref, bo_ref, g_ref, bt_ref, o_ref, *, eps):
    # o = LayerNorm(GELU(x @ wi + bi) @ wo2 + bo2 + x); `inter` never leaves VMEM.
    x = x_ref[...]                                                    # bf16 (tm, H)
    inter = jnp.dot(x.astype(jnp.bfloat16), wi_ref[...],
                    preferred_element_type=jnp.float32) + bi_ref[...]
    inter = _gelu(inter)
    y = jnp.dot(inter.astype(jnp.bfloat16), wo_ref[...],
                preferred_element_type=jnp.float32) + bo_ref[...]
    h = y + x.astype(jnp.float32)
    mean = jnp.mean(h, axis=-1, keepdims=True)
    var = jnp.mean((h - mean) ** 2, axis=-1, keepdims=True)
    o_ref[...] = ((h - mean) * lax.rsqrt(var + eps)) * g_ref[...] + bt_ref[...]


def ffn_fused(x, wi, bi, wo2, bo2, gamma, beta, eps=1e-12, block_rows=None):
    M, H = x.shape
    _, I = wi.shape
    tm = _row_tile(M, block_rows)
    return pl.pallas_call(
        functools.partial(_ffn_kernel, eps=eps),
        out_shape=jax.ShapeDtypeStruct((M, H), jnp.float32),
        grid=(M // tm,),
        in_specs=[
            pl.BlockSpec((tm, H), lambda i: (i, 0)),
            _resident_spec((H, I), lambda i: (0, 0)),
            _resident_spec((1, I), lambda i: (0, 0)),
            _resident_spec((I, H), lambda i: (0, 0)),
            _resident_spec((1, H), lambda i: (0, 0)),
            _resident_spec((1, H), lambda i: (0, 0)),
            _resident_spec((1, H), lambda i: (0, 0)),
        ],
        out_specs=pl.BlockSpec((tm, H), lambda i: (i, 0)),
        compiler_params=_cparams("parallel"),
    )(x, wi, bi.reshape(1, I), wo2, bo2.reshape(1, H),
      gamma.reshape(1, H), beta.reshape(1, H))


def _embed_ln_kernel(a_ref, t_ref, p_ref, g_ref, b_ref, o_ref, *, eps):
    # o = LayerNorm(inputs_embeds + token_type_emb + position_emb); bf16 store.
    h = a_ref[0] + t_ref[0] + p_ref[...]
    mean = jnp.mean(h, axis=-1, keepdims=True)
    var = jnp.mean((h - mean) ** 2, axis=-1, keepdims=True)
    o_ref[0] = (((h - mean) * lax.rsqrt(var + eps)) * g_ref[...]
                + b_ref[...]).astype(o_ref.dtype)


def embed_layernorm(inputs_embeds, type_e, pos_emb, gamma, beta, eps=1e-12):
    B, S, H = inputs_embeds.shape
    ts = _row_tile(S)
    return pl.pallas_call(
        functools.partial(_embed_ln_kernel, eps=eps),
        out_shape=jax.ShapeDtypeStruct((B, S, H), jnp.bfloat16),
        grid=(B, S // ts),
        in_specs=[
            pl.BlockSpec((1, ts, H), lambda b, s: (b, s, 0)),
            pl.BlockSpec((1, ts, H), lambda b, s: (b, s, 0)),
            pl.BlockSpec((ts, H), lambda b, s: (s, 0)),
            _resident_spec((1, H), lambda b, s: (0, 0)),
            _resident_spec((1, H), lambda b, s: (0, 0)),
        ],
        out_specs=pl.BlockSpec((1, ts, H), lambda b, s: (b, s, 0)),
        compiler_params=_cparams("parallel", "parallel"),
    )(inputs_embeds, type_e, pos_emb, gamma.reshape(1, H), beta.reshape(1, H))


def _attn_probs_kernel(qkv_ref, mask_ref, probs_ref, ctx_ref, *, hg, dh):
    # qkv : [1, S, 3*hg*dh] bf16 = [q_g | k_g | v_g] for this head group
    # mask: [1, 1, S] additive (-10000 on masked keys), f32
    # probs (hooked) uses the EXACT softmax normalization.
    qkv = qkv_ref[0]
    mask = mask_ref[0]                               # (1, S) broadcasts over rows
    gw = hg * dh
    ctx_parts = []
    for h in range(hg):                              # short static loop (group only)
        q = qkv[:, h * dh:(h + 1) * dh]              # scale already folded into w_qkv
        k = qkv[:, gw + h * dh:gw + (h + 1) * dh]
        v = qkv[:, 2 * gw + h * dh:2 * gw + (h + 1) * dh]
        s = lax.dot_general(q, k, (((1,), (1,)), ((), ())),
                            preferred_element_type=jnp.float32)       # (S, S)
        s = s + mask
        m = jnp.max(s, axis=-1, keepdims=True)
        e = jnp.exp(s - m)
        p = e / jnp.sum(e, axis=-1, keepdims=True)                    # exact softmax
        probs_ref[0, h] = p                                           # hook output
        ctx_parts.append(jnp.dot(p.astype(jnp.bfloat16), v,
                                 preferred_element_type=jnp.float32))
    ctx = ctx_parts[0] if hg == 1 else jnp.concatenate(ctx_parts, axis=-1)
    ctx_ref[0] = ctx.astype(ctx_ref.dtype)           # single lane-dense store


def _attn_noprobs_kernel(qkv_ref, mask_ref, ctx_ref, *, hg, dh):
    # fast path when the dropout/attention_probs hook is not requested:
    # no probs HBM writeback, approx reciprocal for the softmax denominator.
    qkv = qkv_ref[0]
    mask = mask_ref[0]
    gw = hg * dh
    ctx_parts = []
    for h in range(hg):
        q = qkv[:, h * dh:(h + 1) * dh]
        k = qkv[:, gw + h * dh:gw + (h + 1) * dh]
        v = qkv[:, 2 * gw + h * dh:2 * gw + (h + 1) * dh]
        s = lax.dot_general(q, k, (((1,), (1,)), ((), ())),
                            preferred_element_type=jnp.float32)
        s = s + mask
        m = jnp.max(s, axis=-1, keepdims=True)
        e = jnp.exp(s - m)
        p = e * pl.reciprocal(jnp.sum(e, axis=-1, keepdims=True), approx=True)
        ctx_parts.append(jnp.dot(p.astype(jnp.bfloat16), v,
                                 preferred_element_type=jnp.float32))
    ctx = ctx_parts[0] if hg == 1 else jnp.concatenate(ctx_parts, axis=-1)
    ctx_ref[0] = ctx.astype(ctx_ref.dtype)


def attention(qkv, mask, num_heads, head_dim, heads_per_group, capture_probs):
    B, S, threeH = qkv.shape
    H = num_heads * head_dim
    hg = heads_per_group
    n_groups = num_heads // hg
    gw = 3 * hg * head_dim           # packed qkv width per group
    cw = hg * head_dim               # ctx width per group
    in_specs = [
        pl.BlockSpec((1, S, gw), lambda b, g: (b, 0, g)),
        pl.BlockSpec((1, 1, S), lambda b, g: (b, 0, 0)),
    ]
    if capture_probs:
        kernel = functools.partial(_attn_probs_kernel, hg=hg, dh=head_dim)
        out_shape = (jax.ShapeDtypeStruct((B, num_heads, S, S), jnp.float32),
                     jax.ShapeDtypeStruct((B, S, H), jnp.bfloat16))
        out_specs = (pl.BlockSpec((1, hg, S, S), lambda b, g: (b, g, 0, 0)),
                     pl.BlockSpec((1, S, cw), lambda b, g: (b, 0, g)))
    else:
        kernel = functools.partial(_attn_noprobs_kernel, hg=hg, dh=head_dim)
        out_shape = jax.ShapeDtypeStruct((B, S, H), jnp.bfloat16)
        out_specs = pl.BlockSpec((1, S, cw), lambda b, g: (b, 0, g))
    out = pl.pallas_call(
        kernel, out_shape=out_shape, grid=(B, n_groups),
        in_specs=in_specs, out_specs=out_specs,
        compiler_params=_cparams("parallel", "parallel"),
    )(qkv, mask)
    if capture_probs:
        probs, ctx = out
        return probs, ctx
    return None, out


# ----------------------------------------------------------------------------
# Synthetic BERT-like model (parameters initialized deterministically)
# ----------------------------------------------------------------------------
def init_params(key, H, I, S, num_heads, n_types=2):
    dh = H // num_heads
    hg = _head_group(num_heads, dh)
    ks = jax.random.split(key, 12)
    wf = lambda k, shape: 0.02 * jax.random.normal(k, shape, jnp.float32)
    wb = lambda k, shape: wf(k, shape).astype(jnp.bfloat16)   # bf16 matmul weights

    wq, wk, wv = wf(ks[2], (H, H)), wf(ks[3], (H, H)), wf(ks[4], (H, H))
    bq = bk = bv = jnp.zeros((H,), jnp.float32)
    # fold 1/sqrt(dh) softmax scale into the Q projection (pure preprocessing).
    scale = 1.0 / math.sqrt(dh)
    wq = wq * scale
    bq = bq * scale
    # pack columns per head-group as [q_g | k_g | v_g] so the attention kernel
    # DMAs one contiguous, lane-aligned block per (batch, group) grid step.
    w_cols, b_cols = [], []
    for g0 in range(0, num_heads, hg):
        sl = slice(g0 * dh, (g0 + hg) * dh)
        w_cols += [wq[:, sl], wk[:, sl], wv[:, sl]]
        b_cols += [bq[sl], bk[sl], bv[sl]]
    w_qkv = jnp.concatenate(w_cols, axis=1).astype(jnp.bfloat16)
    b_qkv = jnp.concatenate(b_cols, axis=0)

    return {
        "type_emb": wf(ks[0], (n_types, H)),
        "pos_emb": wf(ks[1], (S, H)),
        "emb_ln_g": jnp.ones((H,), jnp.float32),
        "emb_ln_b": jnp.zeros((H,), jnp.float32),
        "w_qkv": w_qkv, "b_qkv": b_qkv,
        "wo": wb(ks[5], (H, H)), "bo": jnp.zeros((H,), jnp.float32),
        "attn_ln_g": jnp.ones((H,), jnp.float32),
        "attn_ln_b": jnp.zeros((H,), jnp.float32),
        "wi": wb(ks[6], (H, I)), "bi": jnp.zeros((I,), jnp.float32),
        "wo2": wb(ks[7], (I, H)), "bo2": jnp.zeros((H,), jnp.float32),
        "out_ln_g": jnp.ones((H,), jnp.float32),
        "out_ln_b": jnp.zeros((H,), jnp.float32),
        "wp": wb(ks[8], (H, H)), "bp": jnp.zeros((H,), jnp.float32),
    }


def bert_forward(params, inputs_embeds, token_type_ids, attention_mask,
                 num_heads, capture_probs):
    B, S, H = inputs_embeds.shape
    nh = num_heads
    dh = H // nh
    hg = _head_group(nh, dh)
    captured = {}

    # ---- embeddings: inputs_embeds + token_type + position, then LayerNorm (bf16 out)
    type_e = jnp.take(params["type_emb"], token_type_ids, axis=0)       # glue gather
    hidden3 = embed_layernorm(inputs_embeds, type_e, params["pos_emb"],
                              params["emb_ln_g"], params["emb_ln_b"])   # [B,S,H] bf16
    captured["embeddings"] = hidden3
    hidden = hidden3.reshape(B * S, H)

    # ---- self-attention: fused, group-packed QKV projection (scale pre-folded)
    qkv = linear(hidden, params["w_qkv"], params["b_qkv"],
                 out_dtype=jnp.bfloat16).reshape(B, S, 3 * H)

    ext_mask = (1.0 - attention_mask.astype(jnp.float32)) * -10000.0    # [B, S]
    ext_mask = ext_mask.reshape(B, 1, S)

    probs, ctx = attention(qkv, ext_mask, nh, dh, hg, capture_probs)
    if capture_probs:
        # what the dropout-layer hook captures (dropout is identity in eval)
        captured["encoder.layer.0.attention.self.attention_probs"] = probs

    # output projection + residual + LayerNorm fused in one kernel (bf16 out)
    attn_out = linear_add_layernorm(ctx.reshape(B * S, H), params["wo"], params["bo"],
                                    hidden, params["attn_ln_g"], params["attn_ln_b"])
    captured["encoder.layer.0.attention.output"] = attn_out.reshape(B, S, H)

    # ---- feed-forward: wi + GELU + wo2 + residual + LayerNorm fused, inter in VMEM
    layer_out = ffn_fused(attn_out, params["wi"], params["bi"],
                          params["wo2"], params["bo2"],
                          params["out_ln_g"], params["out_ln_b"])       # f32
    last_hidden = layer_out.reshape(B, S, H)
    captured["encoder.layer.0.output"] = last_hidden

    # ---- pooler: tanh(W @ hidden[:, 0])
    pooled = linear(last_hidden[:, 0, :], params["wp"], params["bp"], activation="tanh")

    return last_hidden, pooled, captured


# ----------------------------------------------------------------------------
# OutputsExtractor: forward == wrapped-model forward; hooks emulated by
# storing captured intermediates in `outputs_store` (dropout -> attention_probs).
# ----------------------------------------------------------------------------
class OutputsExtractor:
    def __init__(self, params, layer_names, num_heads):
        self.params = params
        self.num_heads = num_heads
        # rename '...dropout' -> '...attention_probs', as the PyTorch hook does
        self.layer_names = [n.replace("dropout", "attention_probs") for n in layer_names]
        # only compute/write attention probs when a dropout hook actually asks for them
        capture_probs = any("attention_probs" in n for n in self.layer_names)
        self.outputs_store = {}
        self._fwd = jax.jit(
            lambda p, x, t, m: bert_forward(p, x, t, m, num_heads, capture_probs))
        # TODO(synk): retain_grad / gc.collect / torch.cuda.empty_cache have no
        # JAX equivalent (autodiff is functional); hooks are emulated by value capture.

    def remove_hooks(self):
        pass

    def clear_items(self):
        self.outputs_store = {}

    def __call__(self, inputs_embeddings, token_type_ids, attention_mask):
        last_hidden, pooled, captured = self._fwd(
            self.params, inputs_embeddings, token_type_ids, attention_mask)
        for name in self.layer_names:
            if name in captured:
                self.outputs_store[name] = captured[name]
        return last_hidden, pooled

    # keep the PyTorch-style call name too
    forward = __call__


# ----------------------------------------------------------------------------
if __name__ == "__main__":
    B, S, H, NH, I = 2, 8, 32, 4, 64

    key = jax.random.PRNGKey(0)
    k_x, k_p = jax.random.split(key)

    inputs_embeddings = jax.random.normal(k_x, (B, S, H), jnp.float32)
    token_type_ids = jnp.zeros((B, S), jnp.int32).at[:, S // 2:].set(1)
    attention_mask = jnp.ones((B, S), jnp.int32).at[1, 6:].set(0)

    params = init_params(k_p, H, I, S, NH)

    extractor = OutputsExtractor(
        params,
        layer_names=[
            "encoder.layer.0.attention.self.dropout",   # -> attention_probs
            "encoder.layer.0.output",
        ],
        num_heads=NH,
    )

    last_hidden, pooled = extractor(inputs_embeddings, token_type_ids, attention_mask)
    jax.block_until_ready((last_hidden, pooled))
    jax.block_until_ready(extractor.outputs_store)

    assert last_hidden.shape == (B, S, H)
    assert pooled.shape == (B, H)
    probs = extractor.outputs_store["encoder.layer.0.attention.self.attention_probs"]
    assert probs.shape == (B, NH, S, S)
    assert extractor.outputs_store["encoder.layer.0.output"].shape == (B, S, H)
    assert bool(jnp.all(jnp.isfinite(last_hidden)))
    assert bool(jnp.all(jnp.isfinite(probs)))
    # hooked probs use the exact softmax normalization -> rows sum to ~1 tightly
    assert bool(jnp.all(jnp.abs(jnp.sum(probs, axis=-1) - 1.0) < 1e-3))

    print("KERNEL_OK")
</pallas_src>

<mosaic_0001>
module attributes {stable_mosaic.version = 11 : i64} {
  func.func @_linear_add_ln_kernel(%arg0: i32, %arg1: memref<16x32xbf16, #tpu.memory_space<vmem>>, %arg2: memref<32x32xbf16, #tpu.memory_space<vmem>>, %arg3: memref<1x32xf32, #tpu.memory_space<vmem>>, %arg4: memref<16x32xbf16, #tpu.memory_space<vmem>>, %arg5: memref<1x32xf32, #tpu.memory_space<vmem>>, %arg6: memref<1x32xf32, #tpu.memory_space<vmem>>, %arg7: memref<16x32xbf16, #tpu.memory_space<vmem>>) attributes {dimension_semantics = [#tpu.dimension_semantics<parallel>], iteration_bounds = array<i64: 1>, scalar_prefetch = 0 : i64, scratch_operands = 0 : i64, tpu.core_type = #tpu.core_type<tc>, window_params = [{transform_indices = @transform_0, window_bounds = array<i64: 16, 32>}, {pipeline_mode = #tpu.pipeline_mode<synchronous>, transform_indices = @transform_1, window_bounds = array<i64: 32, 32>}, {pipeline_mode = #tpu.pipeline_mode<synchronous>, transform_indices = @transform_2, window_bounds = array<i64: 1, 32>}, {transform_indices = @transform_3, window_bounds = array<i64: 16, 32>}, {pipeline_mode = #tpu.pipeline_mode<synchronous>, transform_indices = @transform_4, window_bounds = array<i64: 1, 32>}, {pipeline_mode = #tpu.pipeline_mode<synchronous>, transform_indices = @transform_5, window_bounds = array<i64: 1, 32>}, {transform_indices = @transform_6, window_bounds = array<i64: 16, 32>}]} {
    %c0 = arith.constant 0 : index
    %c0_0 = arith.constant 0 : index
    %0 = vector.load %arg1[%c0, %c0_0] : memref<16x32xbf16, #tpu.memory_space<vmem>>, vector<16x32xbf16>
    %c0_1 = arith.constant 0 : index
    %c0_2 = arith.constant 0 : index
    %1 = vector.load %arg2[%c0_1, %c0_2] : memref<32x32xbf16, #tpu.memory_space<vmem>>, vector<32x32xbf16>
    %cst = arith.constant dense<0.000000e+00> : vector<16x32xf32>
    %2 = tpu.matmul %0, %1, %cst {dimension_numbers = #tpu.dot_dimension_numbers<[1], [0], [0], [1], [0, 0, 1, 1], [], []>} : vector<16x32xbf16>, vector<32x32xbf16>, vector<16x32xf32> -> vector<16x32xf32>
    %c0_3 = arith.constant 0 : index
    %c0_4 = arith.constant 0 : index
    %3 = vector.load %arg3[%c0_3, %c0_4] : memref<1x32xf32, #tpu.memory_space<vmem>>, vector<1x32xf32>
    %4 = vector.broadcast %3 : vector<1x32xf32> to vector<16x32xf32>
    %5 = arith.addf %2, %4 : vector<16x32xf32>
    %c0_5 = arith.constant 0 : index
    %c0_6 = arith.constant 0 : index
    %6 = vector.load %arg4[%c0_5, %c0_6] : memref<16x32xbf16, #tpu.memory_space<vmem>>, vector<16x32xbf16>
    %7 = arith.extf %6 : vector<16x32xbf16> to vector<16x32xf32>
    %8 = arith.addf %5, %7 : vector<16x32xf32>
    %cst_7 = arith.constant dense<0.000000e+00> : vector<16xf32>
    %9 = vector.multi_reduction <add>, %8, %cst_7 [1] : vector<16x32xf32> to vector<16xf32>
    %10 = vector.shape_cast %9 : vector<16xf32> to vector<16x1xf32>
    %cst_8 = arith.constant 3.200000e+01 : f32
    %11 = vector.broadcast %cst_8 : f32 to vector<16x1xf32>
    %12 = arith.divf %10, %11 : vector<16x1xf32>
    %13 = vector.broadcast %12 : vector<16x1xf32> to vector<16x32xf32>
    %14 = arith.subf %8, %13 : vector<16x32xf32>
    %15 = arith.mulf %14, %14 : vector<16x32xf32>
    %cst_9 = arith.constant dense<0.000000e+00> : vector<16xf32>
    %16 = vector.multi_reduction <add>, %15, %cst_9 [1] : vector<16x32xf32> to vector<16xf32>
    %17 = vector.shape_cast %16 : vector<16xf32> to vector<16x1xf32>
    %cst_10 = arith.constant 3.200000e+01 : f32
    %18 = vector.broadcast %cst_10 : f32 to vector<16x1xf32>
    %19 = arith.divf %17, %18 : vector<16x1xf32>
    %20 = vector.broadcast %12 : vector<16x1xf32> to vector<16x32xf32>
    %21 = arith.subf %8, %20 : vector<16x32xf32>
    %cst_11 = arith.constant 9.99999996E-13 : f32
    %22 = vector.broadcast %cst_11 : f32 to vector<16x1xf32>
    %23 = arith.addf %19, %22 : vector<16x1xf32>
    %24 = math.rsqrt %23 : vector<16x1xf32>
    %25 = vector.broadcast %24 : vector<16x1xf32> to vector<16x32xf32>
    %26 = arith.mulf %21, %25 : vector<16x32xf32>
    %c0_12 = arith.constant 0 : index
    %c0_13 = arith.constant 0 : index
    %27 = vector.load %arg5[%c0_12, %c0_13] : memref<1x32xf32, #tpu.memory_space<vmem>>, vector<1x32xf32>
    %28 = vector.broadcast %27 : vector<1x32xf32> to vector<16x32xf32>
    %29 = arith.mulf %26, %28 : vector<16x32xf32>
    %c0_14 = arith.constant 0 : index
    %c0_15 = arith.constant 0 : index
    %30 = vector.load %arg6[%c0_14, %c0_15] : memref<1x32xf32, #tpu.memory_space<vmem>>, vector<1x32xf32>
    %31 = vector.broadcast %30 : vector<1x32xf32> to vector<16x32xf32>
    %32 = arith.addf %29, %31 : vector<16x32xf32>
    %33 = arith.truncf %32 : vector<16x32xf32> to vector<16x32xbf16>
    %c0_16 = arith.constant 0 : index
    %c0_17 = arith.constant 0 : index
    %34 = vector.load %arg7[%c0_16, %c0_17] : memref<16x32xbf16, #tpu.memory_space<vmem>>, vector<16x32xbf16>
    tpu.vector_store %arg7[%c0_16, %c0_17], %33 {strides = array<i32>} : memref<16x32xbf16, #tpu.memory_space<vmem>>, vector<16x32xbf16>,
    return
  }
  func.func @transform_0(%arg0: i32) -> (i32, i32) {
    %c0_i32 = arith.constant 0 : i32
    %c0_i32_0 = arith.constant 0 : i32
    return %arg0, %c0_i32 : i32, i32
  }
  func.func @transform_1(%arg0: i32) -> (i32, i32) {
    %c0_i32 = arith.constant 0 : i32
    %c0_i32_0 = arith.constant 0 : i32
    %c0_i32_1 = arith.constant 0 : i32
    return %c0_i32, %c0_i32_0 : i32, i32
  }
  func.func @transform_2(%arg0: i32) -> (i32, i32) {
    %c0_i32 = arith.constant 0 : i32
    %c0_i32_0 = arith.constant 0 : i32
    %c0_i32_1 = arith.constant 0 : i32
    return %c0_i32, %c0_i32_0 : i32, i32
  }
  func.func @transform_3(%arg0: i32) -> (i32, i32) {
    %c0_i32 = arith.constant 0 : i32
    %c0_i32_0 = arith.constant 0 : i32
    return %arg0, %c0_i32 : i32, i32
  }
  func.func @transform_4(%arg0: i32) -> (i32, i32) {
    %c0_i32 = arith.constant 0 : i32
    %c0_i32_0 = arith.constant 0 : i32
    %c0_i32_1 = arith.constant 0 : i32
    return %c0_i32, %c0_i32_0 : i32, i32
  }
  func.func @transform_5(%arg0: i32) -> (i32, i32) {
    %c0_i32 = arith.constant 0 : i32
    %c0_i32_0 = arith.constant 0 : i32
    %c0_i32_1 = arith.constant 0 : i32
    return %c0_i32, %c0_i32_0 : i32, i32
  }
  func.func @transform_6(%arg0: i32) -> (i32, i32) {
    %c0_i32 = arith.constant 0 : i32
    %c0_i32_0 = arith.constant 0 : i32
    return %arg0, %c0_i32 : i32, i32
  }
}

module attributes {stable_mosaic.version = 11 : i64} {
  func.func @_embed_ln_kernel(%arg0: i32, %arg1: i32, %arg2: memref<1x8x32xf32, #tpu.memory_space<vmem>>, %arg3: memref<1x8x32xf32, #tpu.memory_space<vmem>>, %arg4: memref<8x32xf32, #tpu.memory_space<vmem>>, %arg5: memref<1x32xf32, #tpu.memory_space<vmem>>, %arg6: memref<1x32xf32, #tpu.memory_space<vmem>>, %arg7: memref<1x8x32xbf16, #tpu.memory_space<vmem>>) attributes {dimension_semantics = [#tpu.dimension_semantics<parallel>, #tpu.dimension_semantics<parallel>], iteration_bounds = array<i64: 2, 1>, scalar_prefetch = 0 : i64, scratch_operands = 0 : i64, tpu.core_type = #tpu.core_type<tc>, window_params = [{transform_indices = @transform_0, window_bounds = array<i64: 1, 8, 32>}, {transform_indices = @transform_1, window_bounds = array<i64: 1, 8, 32>}, {transform_indices = @transform_2, window_bounds = array<i64: 8, 32>}, {pipeline_mode = #tpu.pipeline_mode<synchronous>, transform_indices = @transform_3, window_bounds = array<i64: 1, 32>}, {pipeline_mode = #tpu.pipeline_mode<synchronous>, transform_indices = @transform_4, window_bounds = array<i64: 1, 32>}, {transform_indices = @transform_5, window_bounds = array<i64: 1, 8, 32>}]} {
    %c0 = arith.constant 0 : index
    %c0_0 = arith.constant 0 : index
    %c0_1 = arith.constant 0 : index
    %0 = vector.load %arg2[%c0, %c0_0, %c0_1] : memref<1x8x32xf32, #tpu.memory_space<vmem>>, vector<1x8x32xf32>
    %1 = vector.shape_cast %0 : vector<1x8x32xf32> to vector<8x32xf32>
    %c0_2 = arith.constant 0 : index
    %c0_3 = arith.constant 0 : index
    %c0_4 = arith.constant 0 : index
    %2 = vector.load %arg3[%c0_2, %c0_3, %c0_4] : memref<1x8x32xf32, #tpu.memory_space<vmem>>, vector<1x8x32xf32>
    %3 = vector.shape_cast %2 : vector<1x8x32xf32> to vector<8x32xf32>
    %4 = arith.addf %1, %3 : vector<8x32xf32>
    %c0_5 = arith.constant 0 : index
    %c0_6 = arith.constant 0 : index
    %5 = vector.load %arg4[%c0_5, %c0_6] : memref<8x32xf32, #tpu.memory_space<vmem>>, vector<8x32xf32>
    %6 = arith.addf %4, %5 : vector<8x32xf32>
    %cst = arith.constant dense<0.000000e+00> : vector<8xf32>
    %7 = vector.multi_reduction <add>, %6, %cst [1] : vector<8x32xf32> to vector<8xf32>
    %8 = vector.shape_cast %7 : vector<8xf32> to vector<8x1xf32>
    %cst_7 = arith.constant 3.200000e+01 : f32
    %9 = vector.broadcast %cst_7 : f32 to vector<8x1xf32>
    %10 = arith.divf %8, %9 : vector<8x1xf32>
    %11 = vector.broadcast %10 : vector<8x1xf32> to vector<8x32xf32>
    %12 = arith.subf %6, %11 : vector<8x32xf32>
    %13 = arith.mulf %12, %12 : vector<8x32xf32>
    %cst_8 = arith.constant dense<0.000000e+00> : vector<8xf32>
    %14 = vector.multi_reduction <add>, %13, %cst_8 [1] : vector<8x32xf32> to vector<8xf32>
    %15 = vector.shape_cast %14 : vector<8xf32> to vector<8x1xf32>
    %cst_9 = arith.constant 3.200000e+01 : f32
    %16 = vector.broadcast %cst_9 : f32 to vector<8x1xf32>
    %17 = arith.divf %15, %16 : vector<8x1xf32>
    %18 = vector.broadcast %10 : vector<8x1xf32> to vector<8x32xf32>
    %19 = arith.subf %6, %18 : vector<8x32xf32>
    %cst_10 = arith.constant 9.99999996E-13 : f32
    %20 = vector.broadcast %cst_10 : f32 to vector<8x1xf32>
    %21 = arith.addf %17, %20 : vector<8x1xf32>
    %22 = math.rsqrt %21 : vector<8x1xf32>
    %23 = vector.broadcast %22 : vector<8x1xf32> to vector<8x32xf32>
    %24 = arith.mulf %19, %23 : vector<8x32xf32>
    %c0_11 = arith.constant 0 : index
    %c0_12 = arith.constant 0 : index
    %25 = vector.load %arg5[%c0_11, %c0_12] : memref<1x32xf32, #tpu.memory_space<vmem>>, vector<1x32xf32>
    %26 = vector.broadcast %25 : vector<1x32xf32> to vector<8x32xf32>
    %27 = arith.mulf %24, %26 : vector<8x32xf32>
    %c0_13 = arith.constant 0 : index
    %c0_14 = arith.constant 0 : index
    %28 = vector.load %arg6[%c0_13, %c0_14] : memref<1x32xf32, #tpu.memory_space<vmem>>, vector<1x32xf32>
    %29 = vector.broadcast %28 : vector<1x32xf32> to vector<8x32xf32>
    %30 = arith.addf %27, %29 : vector<8x32xf32>
    %31 = arith.truncf %30 : vector<8x32xf32> to vector<8x32xbf16>
    %c0_15 = arith.constant 0 : index
    %c0_16 = arith.constant 0 : index
    %c0_17 = arith.constant 0 : index
    %32 = vector.load %arg7[%c0_15, %c0_16, %c0_17] : memref<1x8x32xbf16, #tpu.memory_space<vmem>>, vector<1x8x32xbf16>
    %33 = vector.shape_cast %32 : vector<1x8x32xbf16> to vector<8x32xbf16>
    %34 = vector.shape_cast %31 : vector<8x32xbf16> to vector<1x8x32xbf16>
    tpu.vector_store %arg7[%c0_15, %c0_16, %c0_17], %34 {strides = array<i32>} : memref<1x8x32xbf16, #tpu.memory_space<vmem>>, vector<1x8x32xbf16>,
    return
  }
  func.func @transform_0(%arg0: i32, %arg1: i32) -> (i32, i32, i32) {
    %c0_i32 = arith.constant 0 : i32
    %c0_i32_0 = arith.constant 0 : i32
    return %arg0, %arg1, %c0_i32 : i32, i32, i32
  }
  func.func @transform_1(%arg0: i32, %arg1: i32) -> (i32, i32, i32) {
    %c0_i32 = arith.constant 0 : i32
    %c0_i32_0 = arith.constant 0 : i32
    return %arg0, %arg1, %c0_i32 : i32, i32, i32
  }
  func.func @transform_2(%arg0: i32, %arg1: i32) -> (i32, i32) {
    %c0_i32 = arith.constant 0 : i32
    %c0_i32_0 = arith.constant 0 : i32
    return %arg1, %c0_i32 : i32, i32
  }
  func.func @transform_3(%arg0: i32, %arg1: i32) -> (i32, i32) {
    %c0_i32 = arith.constant 0 : i32
    %c0_i32_0 = arith.constant 0 : i32
    %c0_i32_1 = arith.constant 0 : i32
    return %c0_i32, %c0_i32_0 : i32, i32
  }
  func.func @transform_4(%arg0: i32, %arg1: i32) -> (i32, i32) {
    %c0_i32 = arith.constant 0 : i32
    %c0_i32_0 = arith.constant 0 : i32
    %c0_i32_1 = arith.constant 0 : i32
    return %c0_i32, %c0_i32_0 : i32, i32
  }
  func.func @transform_5(%arg0: i32, %arg1: i32) -> (i32, i32, i32) {
    %c0_i32 = arith.constant 0 : i32
    %c0_i32_0 = arith.constant 0 : i32
    return %arg0, %arg1, %c0_i32 : i32, i32, i32
  }
}

module attributes {stable_mosaic.version = 11 : i64} {
  func.func @_attn_probs_kernel(%arg0: i32, %arg1: i32, %arg2: memref<1x8x96xbf16, #tpu.memory_space<vmem>>, %arg3: memref<1x1x8xf32, #tpu.memory_space<vmem>>, %arg4: memref<1x4x8x8xf32, #tpu.memory_space<vmem>>, %arg5: memref<1x8x32xbf16, #tpu.memory_space<vmem>>) attributes {dimension_semantics = [#tpu.dimension_semantics<parallel>, #tpu.dimension_semantics<parallel>], iteration_bounds = array<i64: 2, 1>, scalar_prefetch = 0 : i64, scratch_operands = 0 : i64, tpu.core_type = #tpu.core_type<tc>, window_params = [{transform_indices = @transform_0, window_bounds = array<i64: 1, 8, 96>}, {transform_indices = @transform_1, window_bounds = array<i64: 1, 1, 8>}, {transform_indices = @transform_2, window_bounds = array<i64: 1, 4, 8, 8>}, {transform_indices = @transform_3, window_bounds = array<i64: 1, 8, 32>}]} {
    %c0 = arith.constant 0 : index
    %c0_0 = arith.constant 0 : index
    %c0_1 = arith.constant 0 : index
    %0 = vector.load %arg2[%c0, %c0_0, %c0_1] : memref<1x8x96xbf16, #tpu.memory_space<vmem>>, vector<1x8x96xbf16>
    %1 = vector.shape_cast %0 : vector<1x8x96xbf16> to vector<8x96xbf16>
    %c0_2 = arith.constant 0 : index
    %c0_3 = arith.constant 0 : index
    %c0_4 = arith.constant 0 : index
    %2 = vector.load %arg3[%c0_2, %c0_3, %c0_4] : memref<1x1x8xf32, #tpu.memory_space<vmem>>, vector<1x1x8xf32>
    %3 = vector.shape_cast %2 : vector<1x1x8xf32> to vector<1x8xf32>
    %4 = vector.extract_strided_slice %1 {offsets = [0, 0], sizes = [8, 8], strides = [1, 1]} : vector<8x96xbf16> to vector<8x8xbf16>
    %5 = vector.extract_strided_slice %1 {offsets = [0, 32], sizes = [8, 8], strides = [1, 1]} : vector<8x96xbf16> to vector<8x8xbf16>
    %6 = vector.extract_strided_slice %1 {offsets = [0, 64], sizes = [8, 8], strides = [1, 1]} : vector<8x96xbf16> to vector<8x8xbf16>
    %cst = arith.constant dense<0.000000e+00> : vector<8x8xf32>
    %7 = tpu.matmul %4, %5, %cst {dimension_numbers = #tpu.dot_dimension_numbers<[1], [1], [0], [0], [0, 0, 1, 0], [], []>} : vector<8x8xbf16>, vector<8x8xbf16>, vector<8x8xf32> -> vector<8x8xf32>
    %8 = vector.broadcast %3 : vector<1x8xf32> to vector<8x8xf32>
    %9 = arith.addf %7, %8 : vector<8x8xf32>
    %cst_5 = arith.constant dense<0xFF800000> : vector<8xf32>
    %10 = vector.multi_reduction <maximumf>, %9, %cst_5 [1] : vector<8x8xf32> to vector<8xf32>
    %11 = vector.shape_cast %10 : vector<8xf32> to vector<8x1xf32>
    %12 = vector.broadcast %11 : vector<8x1xf32> to vector<8x8xf32>
    %13 = arith.subf %9, %12 : vector<8x8xf32>
    %14 = math.exp %13 : vector<8x8xf32>
    %cst_6 = arith.constant dense<0.000000e+00> : vector<8xf32>
    %15 = vector.multi_reduction <add>, %14, %cst_6 [1] : vector<8x8xf32> to vector<8xf32>
    %16 = vector.shape_cast %15 : vector<8xf32> to vector<8x1xf32>
    %17 = vector.broadcast %16 : vector<8x1xf32> to vector<8x8xf32>
    %18 = arith.divf %14, %17 : vector<8x8xf32>
    %c0_7 = arith.constant 0 : index
    %c0_8 = arith.constant 0 : index
    %c0_9 = arith.constant 0 : index
    %c0_10 = arith.constant 0 : index
    %19 = vector.load %arg4[%c0_7, %c0_8, %c0_9, %c0_10] : memref<1x4x8x8xf32, #tpu.memory_space<vmem>>, vector<1x1x8x8xf32>
    %20 = vector.shape_cast %19 : vector<1x1x8x8xf32> to vector<8x8xf32>
    %21 = vector.shape_cast %18 : vector<8x8xf32> to vector<1x1x8x8xf32>
    tpu.vector_store %arg4[%c0_7, %c0_8, %c0_9, %c0_10], %21 {strides = array<i32>} : memref<1x4x8x8xf32, #tpu.memory_space<vmem>>, vector<1x1x8x8xf32>,
    %22 = arith.truncf %18 : vector<8x8xf32> to vector<8x8xbf16>
    %cst_11 = arith.constant dense<0.000000e+00> : vector<8x8xf32>
    %23 = tpu.matmul %22, %6, %cst_11 {dimension_numbers = #tpu.dot_dimension_numbers<[1], [0], [0], [1], [0, 0, 1, 1], [], []>} : vector<8x8xbf16>, vector<8x8xbf16>, vector<8x8xf32> -> vector<8x8xf32>
    %24 = vector.extract_strided_slice %1 {offsets = [0, 8], sizes = [8, 8], strides = [1, 1]} : vector<8x96xbf16> to vector<8x8xbf16>
    %25 = vector.extract_strided_slice %1 {offsets = [0, 40], sizes = [8, 8], strides = [1, 1]} : vector<8x96xbf16> to vector<8x8xbf16>
    %26 = vector.extract_strided_slice %1 {offsets = [0, 72], sizes = [8, 8], strides = [1, 1]} : vector<8x96xbf16> to vector<8x8xbf16>
    %cst_12 = arith.constant dense<0.000000e+00> : vector<8x8xf32>
    %27 = tpu.matmul %24, %25, %cst_12 {dimension_numbers = #tpu.dot_dimension_numbers<[1], [1], [0], [0], [0, 0, 1, 0], [], []>} : vector<8x8xbf16>, vector<8x8xbf16>, vector<8x8xf32> -> vector<8x8xf32>
    %28 = vector.broadcast %3 : vector<1x8xf32> to vector<8x8xf32>
    %29 = arith.addf %27, %28 : vector<8x8xf32>
    %cst_13 = arith.constant dense<0xFF800000> : vector<8xf32>
    %30 = vector.multi_reduction <maximumf>, %29, %cst_13 [1] : vector<8x8xf32> to vector<8xf32>
    %31 = vector.shape_cast %30 : vector<8xf32> to vector<8x1xf32>
    %32 = vector.broadcast %31 : vector<8x1xf32> to vector<8x8xf32>
    %33 = arith.subf %29, %32 : vector<8x8xf32>
    %34 = math.exp %33 : vector<8x8xf32>
    %cst_14 = arith.constant dense<0.000000e+00> : vector<8xf32>
    %35 = vector.multi_reduction <add>, %34, %cst_14 [1] : vector<8x8xf32> to vector<8xf32>
    %36 = vector.shape_cast %35 : vector<8xf32> to vector<8x1xf32>
    %37 = vector.broadcast %36 : vector<8x1xf32> to vector<8x8xf32>
    %38 = arith.divf %34, %37 : vector<8x8xf32>
    %c0_15 = arith.constant 0 : index
    %c1 = arith.constant 1 : index
    %c0_16 = arith.constant 0 : index
    %c0_17 = arith.constant 0 : index
    %39 = vector.load %arg4[%c0_15, %c1, %c0_16, %c0_17] : memref<1x4x8x8xf32, #tpu.memory_space<vmem>>, vector<1x1x8x8xf32>
    %40 = vector.shape_cast %39 : vector<1x1x8x8xf32> to vector<8x8xf32>
    %41 = vector.shape_cast %38 : vector<8x8xf32> to vector<1x1x8x8xf32>
    tpu.vector_store %arg4[%c0_15, %c1, %c0_16, %c0_17], %41 {strides = array<i32>} : memref<1x4x8x8xf32, #tpu.memory_space<vmem>>, vector<1x1x8x8xf32>,
    %42 = arith.truncf %38 : vector<8x8xf32> to vector<8x8xbf16>
    %cst_18 = arith.constant dense<0.000000e+00> : vector<8x8xf32>
    %43 = tpu.matmul %42, %26, %cst_18 {dimension_numbers = #tpu.dot_dimension_numbers<[1], [0], [0], [1], [0, 0, 1, 1], [], []>} : vector<8x8xbf16>, vector<8x8xbf16>, vector<8x8xf32> -> vector<8x8xf32>
    %44 = vector.extract_strided_slice %1 {offsets = [0, 16], sizes = [8, 8], strides = [1, 1]} : vector<8x96xbf16> to vector<8x8xbf16>
    %45 = vector.extract_strided_slice %1 {offsets = [0, 48], sizes = [8, 8], strides = [1, 1]} : vector<8x96xbf16> to vector<8x8xbf16>
    %46 = vector.extract_strided_slice %1 {offsets = [0, 80], sizes = [8, 8], strides = [1, 1]} : vector<8x96xbf16> to vector<8x8xbf16>
    %cst_19 = arith.constant dense<0.000000e+00> : vector<8x8xf32>
    %47 = tpu.matmul %44, %45, %cst_19 {dimension_numbers = #tpu.dot_dimension_numbers<[1], [1], [0], [0], [0, 0, 1, 0], [], []>} : vector<8x8xbf16>, vector<8x8xbf16>, vector<8x8xf32> -> vector<8x8xf32>
    %48 = vector.broadcast %3 : vector<1x8xf32> to vector<8x8xf32>
    %49 = arith.addf %47, %48 : vector<8x8xf32>
    %cst_20 = arith.constant dense<0xFF800000> : vector<8xf32>
    %50 = vector.multi_reduction <maximumf>, %49, %cst_20 [1] : vector<8x8xf32> to vector<8xf32>
    %51 = vector.shape_cast %50 : vector<8xf32> to vector<8x1xf32>
    %52 = vector.broadcast %51 : vector<8x1xf32> to vector<8x8xf32>
    %53 = arith.subf %49, %52 : vector<8x8xf32>
    %54 = math.exp %53 : vector<8x8xf32>
    %cst_21 = arith.constant dense<0.000000e+00> : vector<8xf32>
    %55 = vector.multi_reduction <add>, %54, %cst_21 [1] : vector<8x8xf32> to vector<8xf32>
    %56 = vector.shape_cast %55 : vector<8xf32> to vector<8x1xf32>
    %57 = vector.broadcast %56 : vector<8x1xf32> to vector<8x8xf32>
    %58 = arith.divf %54, %57 : vector<8x8xf32>
    %c0_22 = arith.constant 0 : index
    %c2 = arith.constant 2 : index
    %c0_23 = arith.constant 0 : index
    %c0_24 = arith.constant 0 : index
    %59 = vector.load %arg4[%c0_22, %c2, %c0_23, %c0_24] : memref<1x4x8x8xf32, #tpu.memory_space<vmem>>, vector<1x1x8x8xf32>
    %60 = vector.shape_cast %59 : vector<1x1x8x8xf32> to vector<8x8xf32>
    %61 = vector.shape_cast %58 : vector<8x8xf32> to vector<1x1x8x8xf32>
    tpu.vector_store %arg4[%c0_22, %c2, %c0_23, %c0_24], %61 {strides = array<i32>} : memref<1x4x8x8xf32, #tpu.memory_space<vmem>>, vector<1x1x8x8xf32>,
    %62 = arith.truncf %58 : vector<8x8xf32> to vector<8x8xbf16>
    %cst_25 = arith.constant dense<0.000000e+00> : vector<8x8xf32>
    %63 = tpu.matmul %62, %46, %cst_25 {dimension_numbers = #tpu.dot_dimension_numbers<[1], [0], [0], [1], [0, 0, 1, 1], [], []>} : vector<8x8xbf16>, vector<8x8xbf16>, vector<8x8xf32> -> vector<8x8xf32>
    %64 = vector.extract_strided_slice %1 {offsets = [0, 24], sizes = [8, 8], strides = [1, 1]} : vector<8x96xbf16> to vector<8x8xbf16>
    %65 = vector.extract_strided_slice %1 {offsets = [0, 56], sizes = [8, 8], strides = [1, 1]} : vector<8x96xbf16> to vector<8x8xbf16>
    %66 = vector.extract_strided_slice %1 {offsets = [0, 88], sizes = [8, 8], strides = [1, 1]} : vector<8x96xbf16> to vector<8x8xbf16>
    %cst_26 = arith.constant dense<0.000000e+00> : vector<8x8xf32>
    %67 = tpu.matmul %64, %65, %cst_26 {dimension_numbers = #tpu.dot_dimension_numbers<[1], [1], [0], [0], [0, 0, 1, 0], [], []>} : vector<8x8xbf16>, vector<8x8xbf16>, vector<8x8xf32> -> vector<8x8xf32>
    %68 = vector.broadcast %3 : vector<1x8xf32> to vector<8x8xf32>
    %69 = arith.addf %67, %68 : vector<8x8xf32>
    %cst_27 = arith.constant dense<0xFF800000> : vector<8xf32>
    %70 = vector.multi_reduction <maximumf>, %69, %cst_27 [1] : vector<8x8xf32> to vector<8xf32>
    %71 = vector.shape_cast %70 : vector<8xf32> to vector<8x1xf32>
    %72 = vector.broadcast %71 : vector<8x1xf32> to vector<8x8xf32>
    %73 = arith.subf %69, %72 : vector<8x8xf32>
    %74 = math.exp %73 : vector<8x8xf32>
    %cst_28 = arith.constant dense<0.000000e+00> : vector<8xf32>
    %75 = vector.multi_reduction <add>, %74, %cst_28 [1] : vector<8x8xf32> to vector<8xf32>
    %76 = vector.shape_cast %75 : vector<8xf32> to vector<8x1xf32>
    %77 = vector.broadcast %76 : vector<8x1xf32> to vector<8x8xf32>
    %78 = arith.divf %74, %77 : vector<8x8xf32>
    %c0_29 = arith.constant 0 : index
    %c3 = arith.constant 3 : index
    %c0_30 = arith.constant 0 : index
    %c0_31 = arith.constant 0 : index
    %79 = vector.load %arg4[%c0_29, %c3, %c0_30, %c0_31] : memref<1x4x8x8xf32, #tpu.memory_space<vmem>>, vector<1x1x8x8xf32>
    %80 = vector.shape_cast %79 : vector<1x1x8x8xf32> to vector<8x8xf32>
    %81 = vector.shape_cast %78 : vector<8x8xf32> to vector<1x1x8x8xf32>
    tpu.vector_store %arg4[%c0_29, %c3, %c0_30, %c0_31], %81 {strides = array<i32>} : memref<1x4x8x8xf32, #tpu.memory_space<vmem>>, vector<1x1x8x8xf32>,
    %82 = arith.truncf %78 : vector<8x8xf32> to vector<8x8xbf16>
    %cst_32 = arith.constant dense<0.000000e+00> : vector<8x8xf32>
    %83 = tpu.matmul %82, %66, %cst_32 {dimension_numbers = #tpu.dot_dimension_numbers<[1], [0], [0], [1], [0, 0, 1, 1], [], []>} : vector<8x8xbf16>, vector<8x8xbf16>, vector<8x8xf32> -> vector<8x8xf32>
    %84 = tpu.concatenate %23, %43, %63, %83 in 1 : vector<8x8xf32>, vector<8x8xf32>, vector<8x8xf32>, vector<8x8xf32> -> vector<8x32xf32>
    %85 = arith.truncf %84 : vector<8x32xf32> to vector<8x32xbf16>
    %c0_33 = arith.constant 0 : index
    %c0_34 = arith.constant 0 : index
    %c0_35 = arith.constant 0 : index
    %86 = vector.load %arg5[%c0_33, %c0_34, %c0_35] : memref<1x8x32xbf16, #tpu.memory_space<vmem>>, vector<1x8x32xbf16>
    %87 = vector.shape_cast %86 : vector<1x8x32xbf16> to vector<8x32xbf16>
    %88 = vector.shape_cast %85 : vector<8x32xbf16> to vector<1x8x32xbf16>
    tpu.vector_store %arg5[%c0_33, %c0_34, %c0_35], %88 {strides = array<i32>} : memref<1x8x32xbf16, #tpu.memory_space<vmem>>, vector<1x8x32xbf16>,
    return
  }
  func.func @transform_0(%arg0: i32, %arg1: i32) -> (i32, i32, i32) {
    %c0_i32 = arith.constant 0 : i32
    %c0_i32_0 = arith.constant 0 : i32
    return %arg0, %c0_i32, %arg1 : i32, i32, i32
  }
  func.func @transform_1(%arg0: i32, %arg1: i32) -> (i32, i32, i32) {
    %c0_i32 = arith.constant 0 : i32
    %c0_i32_0 = arith.constant 0 : i32
    %c0_i32_1 = arith.constant 0 : i32
    return %arg0, %c0_i32, %c0_i32_0 : i32, i32, i32
  }
  func.func @transform_2(%arg0: i32, %arg1: i32) -> (i32, i32, i32, i32) {
    %c0_i32 = arith.constant 0 : i32
    %c0_i32_0 = arith.constant 0 : i32
    %c0_i32_1 = arith.constant 0 : i32
    return %arg0, %arg1, %c0_i32, %c0_i32_0 : i32, i32, i32, i32
  }
  func.func @transform_3(%arg0: i32, %arg1: i32) -> (i32, i32, i32) {
    %c0_i32 = arith.constant 0 : i32
    %c0_i32_0 = arith.constant 0 : i32
    return %arg0, %c0_i32, %arg1 : i32, i32, i32
  }
}

module attributes {stable_mosaic.version = 11 : i64} {
  func.func @_linear_kernel(%arg0: i32, %arg1: memref<16x32xbf16, #tpu.memory_space<vmem>>, %arg2: memref<32x96xbf16, #tpu.memory_space<vmem>>, %arg3: memref<1x96xf32, #tpu.memory_space<vmem>>, %arg4: memref<16x96xbf16, #tpu.memory_space<vmem>>) attributes {dimension_semantics = [#tpu.dimension_semantics<parallel>], iteration_bounds = array<i64: 1>, scalar_prefetch = 0 : i64, scratch_operands = 0 : i64, tpu.core_type = #tpu.core_type<tc>, window_params = [{transform_indices = @transform_0, window_bounds = array<i64: 16, 32>}, {pipeline_mode = #tpu.pipeline_mode<synchronous>, transform_indices = @transform_1, window_bounds = array<i64: 32, 96>}, {pipeline_mode = #tpu.pipeline_mode<synchronous>, transform_indices = @transform_2, window_bounds = array<i64: 1, 96>}, {transform_indices = @transform_3, window_bounds = array<i64: 16, 96>}]} {
    %c0 = arith.constant 0 : index
    %c0_0 = arith.constant 0 : index
    %0 = vector.load %arg1[%c0, %c0_0] : memref<16x32xbf16, #tpu.memory_space<vmem>>, vector<16x32xbf16>
    %c0_1 = arith.constant 0 : index
    %c0_2 = arith.constant 0 : index
    %1 = vector.load %arg2[%c0_1, %c0_2] : memref<32x96xbf16, #tpu.memory_space<vmem>>, vector<32x96xbf16>
    %cst = arith.constant dense<0.000000e+00> : vector<16x96xf32>
    %2 = tpu.matmul %0, %1, %cst {dimension_numbers = #tpu.dot_dimension_numbers<[1], [0], [0], [1], [0, 0, 1, 1], [], []>} : vector<16x32xbf16>, vector<32x96xbf16>, vector<16x96xf32> -> vector<16x96xf32>
    %c0_3 = arith.constant 0 : index
    %c0_4 = arith.constant 0 : index
    %3 = vector.load %arg3[%c0_3, %c0_4] : memref<1x96xf32, #tpu.memory_space<vmem>>, vector<1x96xf32>
    %4 = vector.broadcast %3 : vector<1x96xf32> to vector<16x96xf32>
    %5 = arith.addf %2, %4 : vector<16x96xf32>
    %6 = arith.truncf %5 : vector<16x96xf32> to vector<16x96xbf16>
    %c0_5 = arith.constant 0 : index
    %c0_6 = arith.constant 0 : index
    %7 = vector.load %arg4[%c0_5, %c0_6] : memref<16x96xbf16, #tpu.memory_space<vmem>>, vector<16x96xbf16>
    tpu.vector_store %arg4[%c0_5, %c0_6], %6 {strides = array<i32>} : memref<16x96xbf16, #tpu.memory_space<vmem>>, vector<16x96xbf16>,
    return
  }
  func.func @transform_0(%arg0: i32) -> (i32, i32) {
    %c0_i32 = arith.constant 0 : i32
    %c0_i32_0 = arith.constant 0 : i32
    return %arg0, %c0_i32 : i32, i32
  }
  func.func @transform_1(%arg0: i32) -> (i32, i32) {
    %c0_i32 = arith.constant 0 : i32
    %c0_i32_0 = arith.constant 0 : i32
    %c0_i32_1 = arith.constant 0 : i32
    return %c0_i32, %c0_i32_0 : i32, i32
  }
  func.func @transform_2(%arg0: i32) -> (i32, i32) {
    %c0_i32 = arith.constant 0 : i32
    %c0_i32_0 = arith.constant 0 : i32
    %c0_i32_1 = arith.constant 0 : i32
    return %c0_i32, %c0_i32_0 : i32, i32
  }
  func.func @transform_3(%arg0: i32) -> (i32, i32) {
    %c0_i32 = arith.constant 0 : i32
    %c0_i32_0 = arith.constant 0 : i32
    return %arg0, %c0_i32 : i32, i32
  }
}

module attributes {stable_mosaic.version = 11 : i64} {
  func.func @_linear_kernel(%arg0: i32, %arg1: memref<2x32xf32, #tpu.memory_space<vmem>>, %arg2: memref<32x32xbf16, #tpu.memory_space<vmem>>, %arg3: memref<1x32xf32, #tpu.memory_space<vmem>>, %arg4: memref<2x32xf32, #tpu.memory_space<vmem>>) attributes {dimension_semantics = [#tpu.dimension_semantics<parallel>], iteration_bounds = array<i64: 1>, scalar_prefetch = 0 : i64, scratch_operands = 0 : i64, tpu.core_type = #tpu.core_type<tc>, window_params = [{transform_indices = @transform_0, window_bounds = array<i64: 2, 32>}, {pipeline_mode = #tpu.pipeline_mode<synchronous>, transform_indices = @transform_1, window_bounds = array<i64: 32, 32>}, {pipeline_mode = #tpu.pipeline_mode<synchronous>, transform_indices = @transform_2, window_bounds = array<i64: 1, 32>}, {transform_indices = @transform_3, window_bounds = array<i64: 2, 32>}]} {
    %c0 = arith.constant 0 : index
    %c0_0 = arith.constant 0 : index
    %0 = vector.load %arg1[%c0, %c0_0] : memref<2x32xf32, #tpu.memory_space<vmem>>, vector<2x32xf32>
    %1 = arith.truncf %0 : vector<2x32xf32> to vector<2x32xbf16>
    %c0_1 = arith.constant 0 : index
    %c0_2 = arith.constant 0 : index
    %2 = vector.load %arg2[%c0_1, %c0_2] : memref<32x32xbf16, #tpu.memory_space<vmem>>, vector<32x32xbf16>
    %cst = arith.constant dense<0.000000e+00> : vector<2x32xf32>
    %3 = tpu.matmul %1, %2, %cst {dimension_numbers = #tpu.dot_dimension_numbers<[1], [0], [0], [1], [0, 0, 1, 1], [], []>} : vector<2x32xbf16>, vector<32x32xbf16>, vector<2x32xf32> -> vector<2x32xf32>
    %c0_3 = arith.constant 0 : index
    %c0_4 = arith.constant 0 : index
    %4 = vector.load %arg3[%c0_3, %c0_4] : memref<1x32xf32, #tpu.memory_space<vmem>>, vector<1x32xf32>
    %5 = vector.broadcast %4 : vector<1x32xf32> to vector<2x32xf32>
    %6 = arith.addf %3, %5 : vector<2x32xf32>
    %7 = math.tanh %6 : vector<2x32xf32>
    %c0_5 = arith.constant 0 : index
    %c0_6 = arith.constant 0 : index
    %8 = vector.load %arg4[%c0_5, %c0_6] : memref<2x32xf32, #tpu.memory_space<vmem>>, vector<2x32xf32>
    tpu.vector_store %arg4[%c0_5, %c0_6], %7 {strides = array<i32>} : memref<2x32xf32, #tpu.memory_space<vmem>>, vector<2x32xf32>,
    return
  }
  func.func @transform_0(%arg0: i32) -> (i32, i32) {
    %c0_i32 = arith.constant 0 : i32
    %c0_i32_0 = arith.constant 0 : i32
    return %arg0, %c0_i32 : i32, i32
  }
  func.func @transform_1(%arg0: i32) -> (i32, i32) {
    %c0_i32 = arith.constant 0 : i32
    %c0_i32_0 = arith.constant 0 : i32
    %c0_i32_1 = arith.constant 0 : i32
    return %c0_i32, %c0_i32_0 : i32, i32
  }
  func.func @transform_2(%arg0: i32) -> (i32, i32) {
    %c0_i32 = arith.constant 0 : i32
    %c0_i32_0 = arith.constant 0 : i32
    %c0_i32_1 = arith.constant 0 : i32
    return %c0_i32, %c0_i32_0 : i32, i32
  }
  func.func @transform_3(%arg0: i32) -> (i32, i32) {
    %c0_i32 = arith.constant 0 : i32
    %c0_i32_0 = arith.constant 0 : i32
    return %arg0, %c0_i32 : i32, i32
  }
}

module attributes {stable_mosaic.version = 11 : i64} {
  func.func @_ffn_kernel(%arg0: i32, %arg1: memref<16x32xbf16, #tpu.memory_space<vmem>>, %arg2: memref<32x64xbf16, #tpu.memory_space<vmem>>, %arg3: memref<1x64xf32, #tpu.memory_space<vmem>>, %arg4: memref<64x32xbf16, #tpu.memory_space<vmem>>, %arg5: memref<1x32xf32, #tpu.memory_space<vmem>>, %arg6: memref<1x32xf32, #tpu.memory_space<vmem>>, %arg7: memref<1x32xf32, #tpu.memory_space<vmem>>, %arg8: memref<16x32xf32, #tpu.memory_space<vmem>>) attributes {dimension_semantics = [#tpu.dimension_semantics<parallel>], iteration_bounds = array<i64: 1>, scalar_prefetch = 0 : i64, scratch_operands = 0 : i64, tpu.core_type = #tpu.core_type<tc>, window_params = [{transform_indices = @transform_0, window_bounds = array<i64: 16, 32>}, {pipeline_mode = #tpu.pipeline_mode<synchronous>, transform_indices = @transform_1, window_bounds = array<i64: 32, 64>}, {pipeline_mode = #tpu.pipeline_mode<synchronous>, transform_indices = @transform_2, window_bounds = array<i64: 1, 64>}, {pipeline_mode = #tpu.pipeline_mode<synchronous>, transform_indices = @transform_3, window_bounds = array<i64: 64, 32>}, {pipeline_mode = #tpu.pipeline_mode<synchronous>, transform_indices = @transform_4, window_bounds = array<i64: 1, 32>}, {pipeline_mode = #tpu.pipeline_mode<synchronous>, transform_indices = @transform_5, window_bounds = array<i64: 1, 32>}, {pipeline_mode = #tpu.pipeline_mode<synchronous>, transform_indices = @transform_6, window_bounds = array<i64: 1, 32>}, {transform_indices = @transform_7, window_bounds = array<i64: 16, 32>}]} {
    %c0 = arith.constant 0 : index
    %c0_0 = arith.constant 0 : index
    %0 = vector.load %arg1[%c0, %c0_0] : memref<16x32xbf16, #tpu.memory_space<vmem>>, vector<16x32xbf16>
    %c0_1 = arith.constant 0 : index
    %c0_2 = arith.constant 0 : index
    %1 = vector.load %arg2[%c0_1, %c0_2] : memref<32x64xbf16, #tpu.memory_space<vmem>>, vector<32x64xbf16>
    %cst = arith.constant dense<0.000000e+00> : vector<16x64xf32>
    %2 = tpu.matmul %0, %1, %cst {dimension_numbers = #tpu.dot_dimension_numbers<[1], [0], [0], [1], [0, 0, 1, 1], [], []>} : vector<16x32xbf16>, vector<32x64xbf16>, vector<16x64xf32> -> vector<16x64xf32>
    %c0_3 = arith.constant 0 : index
    %c0_4 = arith.constant 0 : index
    %3 = vector.load %arg3[%c0_3, %c0_4] : memref<1x64xf32, #tpu.memory_space<vmem>>, vector<1x64xf32>
    %4 = vector.broadcast %3 : vector<1x64xf32> to vector<16x64xf32>
    %5 = arith.addf %2, %4 : vector<16x64xf32>
    %cst_5 = arith.constant 5.000000e-01 : f32
    %6 = vector.broadcast %cst_5 : f32 to vector<16x64xf32>
    %7 = arith.mulf %6, %5 : vector<16x64xf32>
    %cst_6 = arith.constant 0.707106769 : f32
    %8 = vector.broadcast %cst_6 : f32 to vector<16x64xf32>
    %9 = arith.mulf %5, %8 : vector<16x64xf32>
    %10 = math.erf %9 : vector<16x64xf32>
    %cst_7 = arith.constant 1.000000e+00 : f32
    %11 = vector.broadcast %cst_7 : f32 to vector<16x64xf32>
    %12 = arith.addf %11, %10 : vector<16x64xf32>
    %13 = arith.mulf %7, %12 : vector<16x64xf32>
    %14 = arith.truncf %13 : vector<16x64xf32> to vector<16x64xbf16>
    %c0_8 = arith.constant 0 : index
    %c0_9 = arith.constant 0 : index
    %15 = vector.load %arg4[%c0_8, %c0_9] : memref<64x32xbf16, #tpu.memory_space<vmem>>, vector<64x32xbf16>
    %cst_10 = arith.constant dense<0.000000e+00> : vector<16x32xf32>
    %16 = tpu.matmul %14, %15, %cst_10 {dimension_numbers = #tpu.dot_dimension_numbers<[1], [0], [0], [1], [0, 0, 1, 1], [], []>} : vector<16x64xbf16>, vector<64x32xbf16>, vector<16x32xf32> -> vector<16x32xf32>
    %c0_11 = arith.constant 0 : index
    %c0_12 = arith.constant 0 : index
    %17 = vector.load %arg5[%c0_11, %c0_12] : memref<1x32xf32, #tpu.memory_space<vmem>>, vector<1x32xf32>
    %18 = vector.broadcast %17 : vector<1x32xf32> to vector<16x32xf32>
    %19 = arith.addf %16, %18 : vector<16x32xf32>
    %20 = arith.extf %0 : vector<16x32xbf16> to vector<16x32xf32>
    %21 = arith.addf %19, %20 : vector<16x32xf32>
    %cst_13 = arith.constant dense<0.000000e+00> : vector<16xf32>
    %22 = vector.multi_reduction <add>, %21, %cst_13 [1] : vector<16x32xf32> to vector<16xf32>
    %23 = vector.shape_cast %22 : vector<16xf32> to vector<16x1xf32>
    %cst_14 = arith.constant 3.200000e+01 : f32
    %24 = vector.broadcast %cst_14 : f32 to vector<16x1xf32>
    %25 = arith.divf %23, %24 : vector<16x1xf32>
    %26 = vector.broadcast %25 : vector<16x1xf32> to vector<16x32xf32>
    %27 = arith.subf %21, %26 : vector<16x32xf32>
    %28 = arith.mulf %27, %27 : vector<16x32xf32>
    %cst_15 = arith.constant dense<0.000000e+00> : vector<16xf32>
    %29 = vector.multi_reduction <add>, %28, %cst_15 [1] : vector<16x32xf32> to vector<16xf32>
    %30 = vector.shape_cast %29 : vector<16xf32> to vector<16x1xf32>
    %cst_16 = arith.constant 3.200000e+01 : f32
    %31 = vector.broadcast %cst_16 : f32 to vector<16x1xf32>
    %32 = arith.divf %30, %31 : vector<16x1xf32>
    %33 = vector.broadcast %25 : vector<16x1xf32> to vector<16x32xf32>
    %34 = arith.subf %21, %33 : vector<16x32xf32>
    %cst_17 = arith.constant 9.99999996E-13 : f32
    %35 = vector.broadcast %cst_17 : f32 to vector<16x1xf32>
    %36 = arith.addf %32, %35 : vector<16x1xf32>
    %37 = math.rsqrt %36 : vector<16x1xf32>
    %38 = vector.broadcast %37 : vector<16x1xf32> to vector<16x32xf32>
    %39 = arith.mulf %34, %38 : vector<16x32xf32>
    %c0_18 = arith.constant 0 : index
    %c0_19 = arith.constant 0 : index
    %40 = vector.load %arg6[%c0_18, %c0_19] : memref<1x32xf32, #tpu.memory_space<vmem>>, vector<1x32xf32>
    %41 = vector.broadcast %40 : vector<1x32xf32> to vector<16x32xf32>
    %42 = arith.mulf %39, %41 : vector<16x32xf32>
    %c0_20 = arith.constant 0 : index
    %c0_21 = arith.constant 0 : index
    %43 = vector.load %arg7[%c0_20, %c0_21] : memref<1x32xf32, #tpu.memory_space<vmem>>, vector<1x32xf32>
    %44 = vector.broadcast %43 : vector<1x32xf32> to vector<16x32xf32>
    %45 = arith.addf %42, %44 : vector<16x32xf32>
    %c0_22 = arith.constant 0 : index
    %c0_23 = arith.constant 0 : index
    %46 = vector.load %arg8[%c0_22, %c0_23] : memref<16x32xf32, #tpu.memory_space<vmem>>, vector<16x32xf32>
    tpu.vector_store %arg8[%c0_22, %c0_23], %45 {strides = array<i32>} : memref<16x32xf32, #tpu.memory_space<vmem>>, vector<16x32xf32>,
    return
  }
  func.func @transform_0(%arg0: i32) -> (i32, i32) {
    %c0_i32 = arith.constant 0 : i32
    %c0_i32_0 = arith.constant 0 : i32
    return %arg0, %c0_i32 : i32, i32
  }
  func.func @transform_1(%arg0: i32) -> (i32, i32) {
    %c0_i32 = arith.constant 0 : i32
    %c0_i32_0 = arith.constant 0 : i32
    %c0_i32_1 = arith.constant 0 : i32
    return %c0_i32, %c0_i32_0 : i32, i32
  }
  func.func @transform_2(%arg0: i32) -> (i32, i32) {
    %c0_i32 = arith.constant 0 : i32
    %c0_i32_0 = arith.constant 0 : i32
    %c0_i32_1 = arith.constant 0 : i32
    return %c0_i32, %c0_i32_0 : i32, i32
  }
  func.func @transform_3(%arg0: i32) -> (i32, i32) {
    %c0_i32 = arith.constant 0 : i32
    %c0_i32_0 = arith.constant 0 : i32
    %c0_i32_1 = arith.constant 0 : i32
    return %c0_i32, %c0_i32_0 : i32, i32
  }
  func.func @transform_4(%arg0: i32) -> (i32, i32) {
    %c0_i32 = arith.constant 0 : i32
    %c0_i32_0 = arith.constant 0 : i32
    %c0_i32_1 = arith.constant 0 : i32
    return %c0_i32, %c0_i32_0 : i32, i32
  }
  func.func @transform_5(%arg0: i32) -> (i32, i32) {
    %c0_i32 = arith.constant 0 : i32
    %c0_i32_0 = arith.constant 0 : i32
    %c0_i32_1 = arith.constant 0 : i32
    return %c0_i32, %c0_i32_0 : i32, i32
  }
  func.func @transform_6(%arg0: i32) -> (i32, i32) {
    %c0_i32 = arith.constant 0 : i32
    %c0_i32_0 = arith.constant 0 : i32
    %c0_i32_1 = arith.constant 0 : i32
    return %c0_i32, %c0_i32_0 : i32, i32
  }
  func.func @transform_7(%arg0: i32) -> (i32, i32) {
    %c0_i32 = arith.constant 0 : i32
    %c0_i32_0 = arith.constant 0 : i32
    return %arg0, %c0_i32 : i32, i32
  }
}

</mosaic_0001>

<bundles_post_ra>
// kernel: _lambda_.9
= control target key start
LH: loop header
LB: loop body
LE: loop exit
PB: predicated region body
PF: predicated region fallthrough
CT: control target
= control target key end

     0   :  { %vm51_vm0 = vcmask 261120   ;;  %v177_v15 = vmov 32.0   ;;  %vm140_vm6 = vcmask 257024   ;;  %s245_s1 = inlined_call_operand.vmem [shape: bf16[32,32], index: 1, kind: input, shape index: {}]   ;;  %s246_s2 = inlined_call_operand.vmem [shape: f32[1,32], index: 2, kind: input, shape index: {}]   ;;  %s247_s0 = inlined_call_operand.vmem [shape: bf16[16,32], index: 0, kind: input, shape index: {}]   ;;  %s248_s3 = inlined_call_operand.vmem [shape: bf16[16,32], index: 3, kind: input, shape index: {}]   ;;  %s249_s4 = inlined_call_operand.vmem [shape: f32[1,32], index: 4, kind: input, shape index: {}]   ;;  %s250_s5 = inlined_call_operand.vmem [shape: f32[1,32], index: 5, kind: input, shape index: {}]   ;;  %s251_s6 = inlined_call_operand.vmem [shape: bf16[16,32], index: 6, kind: output, shape index: {}]  }
   0x1   :  { %v162_v0 = vld [vmem:[%s245_s1 + $0x8] sm:$0xff]  ;;  %v161_v1 = vld [vmem:[%s245_s1] sm:$0xff]  ;;  %171 = vrcp.f32 %v177_v15 }
   0x2   :  { %61 = vmatpush.bf16.msra.mxu0 %v162_v0  ;;  %v160_v2 = vld [vmem:[%s247_s0] sm:$0xff] }
   0x3   :  { %v164_v3 = vld [vmem:[%s248_s3] sm:$0xff]  }
   0x4   :  { %v168_v4 = vld [vmem:[%s246_s2] ss:$0 sm:$0xff]  ;;  %v165_v5 = vunpack.c.l.bf16 %v164_v3  ;;  %v166_v10 = vunpack.c.h.bf16 %v164_v3 }
   0x5   :  { %v169_v46 = vld [vmem:[%s249_s4] ss:$0 sm:$0xff] }
   0x6   :  { %62 = vmatpush.bf16.msra.mxu0 %v161_v1  ;;  %v170_v49 = vld [vmem:[%s250_s5] ss:$0 sm:$0xff] }
   0x7   :  { %v172_v16 = vpop.eup %171 }
   0x8   :  { %v82_v17 = vmul.f32 32.0, %v172_v16  ;;  %vm86_vm1 = vweird.f32 %v172_v16 }
   0x9   :  { %159 = vmatmul.msk.bf16.vlgmr.msra.gmra.mxu0 %vm51_vm0, %v160_v2 }
   0xa   :  { %v83_v18 = vsub.f32 1.0, %v82_v17 }
   0xc   :  { %v84_v19 = vmul.f32 %v172_v16, %v83_v18 }
   0xe   :  { %v85_v20 = vadd.f32 %v172_v16, %v84_v19 }
  0x10   :  { %v87_v21 = vsel %vm86_vm1, %v172_v16, %v85_v20 }
  0x86   :  { %v64_v6 = vpop.f32.mrf.mxu0 }
  0x87   :  { %v65_v7 = vadd.f32 %v168_v4, %v64_v6 }
  0x89   :  { %v73_v8 = vadd.f32 %v165_v5, %v65_v7 }
  0x8b   :  { %v75_v9 = vsel %vm51_vm0, %v73_v8, 0.0 }
  0x8c   :  { %76 = vadd.xlane.f32.xlu0 %v75_v9 }
  0x8e   :  { %v66_v11 = vpop.f32.mrf.mxu0 }
  0x8f   :  { %v67_v12 = vadd.f32 %v168_v4, %v66_v11 }
  0x91   :  { %v74_v13 = vadd.f32 %v166_v10, %v67_v12 }
  0x93   :  { %v78_v14 = vsel %vm51_vm0, %v74_v13, 0.0 }
  0x94   :  { %79 = vadd.xlane.f32.xlu0 %v78_v14 }
  0xff   :  { %v77_v22 = vpop.xlane.xlu0 %76 }
 0x100   :  { %v88_v23 = vmul.f32 %v87_v21, %v77_v22 }
 0x102   :  { %v90_v24 = vsub.f32 %v73_v8, %v88_v23 }
 0x104   :  { %v92_v25 = vmul.f32 %v90_v24, %v90_v24 }
 0x106   :  { %v94_v26 = vsel %vm51_vm0, %v92_v25, 0.0 }
 0x107   :  { %95 = vadd.xlane.f32.xlu1 %v94_v26  ;;  %v80_v27 = vpop.xlane.xlu0 %79 }
 0x108   :  { %v89_v28 = vmul.f32 %v87_v21, %v80_v27 }
 0x10a   :  { %v91_v29 = vsub.f32 %v74_v13, %v89_v28 }
 0x10c   :  { %v93_v30 = vmul.f32 %v91_v29, %v91_v29 }
 0x10e   :  { %v97_v31 = vsel %vm51_vm0, %v93_v30, 0.0 }
 0x10f   :  { %98 = vadd.xlane.f32.xlu1 %v97_v31 }
 0x17a   :  { %v96_v32 = vpop.xlane.xlu1 %95 }
 0x17b   :  { %v100_v33 = vmul.f32 %v96_v32, %v87_v21 }
 0x17d   :  { %v102_v34 = vadd.f32 1e-12, %v100_v33 }
 0x17f   :  { %173 = vrsqrt.f32 %v102_v34  ;;  %vm110_vm3 = vweird.f32 %v102_v34 }
 0x182   :  { %v99_v35 = vpop.xlane.xlu1 %98 }
 0x183   :  { %v101_v36 = vmul.f32 %v99_v35, %v87_v21 }
 0x185   :  { %v174_v37 = vpop.eup %173  ;;  %v103_v38 = vadd.f32 1e-12, %v101_v36 }
 0x186   :  { %v105_v39 = vmul.f32 %v174_v37, %v102_v34  ;;  %vm111_vm2 = vweird.f32 %v174_v37 }
 0x187   :  { %175 = vrsqrt.f32 %v103_v38  ;;  %vm112_vm4 = vmor %vm110_vm3, %vm111_vm2  ;;  %vm120_vm7 = vweird.f32 %v103_v38 }
 0x188   :  { %v106_v40 = vmul.f32 %v174_v37, %v105_v39 }
 0x18a   :  { %v107_v41 = vmul.f32 0.5, %v106_v40 }
 0x18c   :  { %v108_v42 = vsub.f32 1.5, %v107_v41 }
 0x18d   :  { %v176_v43 = vpop.eup %175 }
 0x18e   :  { %v109_v44 = vmul.f32 %v174_v37, %v108_v42  ;;  %v115_v45 = vmul.f32 %v176_v43, %v103_v38  ;;  %vm121_vm5 = vweird.f32 %v176_v43 }
 0x18f   :  { %vm122_vm8 = vmor %vm120_vm7, %vm121_vm5 }
 0x190   :  { %v113_v47 = vsel %vm112_vm4, %v174_v37, %v109_v44  ;;  %v116_v48 = vmul.f32 %v176_v43, %v115_v45 }
 0x191   :  { %v124_v50 = vmul.f32 %v113_v47, %v90_v24 }
 0x192   :  { %v117_v51 = vmul.f32 0.5, %v116_v48 }
 0x193   :  { %v130_v52 = vmul.f32 %v169_v46, %v124_v50 }
 0x194   :  { %v118_v53 = vsub.f32 1.5, %v117_v51 }
 0x195   :  { %v136_v54 = vadd.f32 %v170_v49, %v130_v52 }
 0x196   :  { %v119_v55 = vmul.f32 %v176_v43, %v118_v53 }
 0x197   :  { %v138_v56 = vpack.c.bf16 %v136_v54, %v136_v54 }
 0x198   :  { %v123_v57 = vsel %vm122_vm8, %v176_v43, %v119_v55 }
 0x199   :  { %141 = vst.msk [vmem:[%s251_s6] sm:$0xf] %vm140_vm6, %v138_v56  ;;  %v125_v58 = vmul.f32 %v123_v57, %v91_v29 }
 0x19b   :  { %v131_v59 = vmul.f32 %v169_v46, %v125_v58 }
 0x19d   :  { %v137_v60 = vadd.f32 %v170_v49, %v131_v59 }
 0x19f   :  { %v139_v61 = vpack.c.bf16 %v137_v60, %v137_v60 }
 0x1a1   :  { %142 = vst.msk [vmem:[%s251_s6 + $0x4] sm:$0xf] %vm140_vm6, %v139_v61 }

// kernel: _lambda_.6
= control target key start
LH: loop header
LB: loop body
LE: loop exit
PB: predicated region body
PF: predicated region fallthrough
CT: control target
= control target key end

     0   :  { %s546_s18 = smov 0   ;;  %s548_s19 = smov 0   ;;  %s597_s0 = inlined_call_operand.vmem [shape: f32[2,8,32], index: 0, kind: input, shape index: {}]   ;;  %s598_s1 = inlined_call_operand.vmem [shape: f32[2,8,32], index: 1, kind: input, shape index: {}]   ;;  %s599_s2 = inlined_call_operand.vmem [shape: f32[8,32], index: 2, kind: input, shape index: {}]   ;;  %s600_s3 = inlined_call_operand.vmem [shape: f32[1,32], index: 3, kind: input, shape index: {}]   ;;  %s601_s4 = inlined_call_operand.vmem [shape: f32[1,32], index: 4, kind: input, shape index: {}]   ;;  %s602_s5 = inlined_call_operand.vmem [shape: bf16[2,8,32], index: 5, kind: output, shape index: {}]  }
   0x1   :  { %s550_s20 = smov 0  }
   0x2 LB: > { %s27_s21 = sadd.s32 1, %s509_s19  ;;  %p454_p0 = scmp.ge.s32.totalorder %s513_s20, 1  ;;  %s513_s20 = sphi %s550_s20, %s15_s20   ;;  %s509_s19 = sphi %s548_s19, %s604_s19   ;;  %s505_s18 = sphi %s546_s18, %s603_s18  }
   0x3   : > { %p29_p1 = scmp.ge.s32.totalorder %s27_s21, 2  ;;  %p228_p2 = scmp.lt.s32.totalorder %s513_s20, 3 }
   0x5   : > { %s606_s21 = smov (%p29_p1, %s27_s21), 0  ;;  %p229_p3 = pnand %p454_p0, %p228_p2 }
   0x6   : > { %p271_p4 = scmp.lt.s32.totalorder (!%p229_p3), %s505_s18, 1 }
   0x7   : > { %232 = sbr.rel (%p229_p3) target bundleno = 292 (0x124), region = 40 }
   0xc   : > { %s608_s18 = smov (!%p271_p4, %s505_s18), 1  ;;  %v299_v2 = vld [vmem:[%s599_s2] sm:$0xff]  ;;  %vm301_vm0 = vcmask 261120   ;;  %v515_v6 = vmov 32.0   ;;  %vm342_vm5 = vcmask 257024  }
   0xd   : > { %s455_s22 = sshll.u32 %s608_s18, 3  ;;  %487 = vrcp.f32 %v515_v6  ;;  %v485_v27 = vld [vmem:[%s600_s3] ss:$0 sm:$0xff]  ;;  %s457_s10 = sshll.u32 %s608_s18, 2 }
   0xe   : > { %s277_s25 = scalar_lea.vmem %s597_s0, %s455_s22  ;;  %s284_s28 = scalar_lea.vmem %s598_s1, %s455_s22  ;;  %v486_v29 = vld [vmem:[%s601_s4] ss:$0 sm:$0xff] }
   0xf   : > { %v296_v0 = vld [vmem:[%s277_s25] sm:$0xff]  ;;  %s295_s13 = scalar_lea.vmem %s602_s5, %s457_s10 }
  0x10   : > { %v297_v1 = vld [vmem:[%s284_s28] sm:$0xff] }
  0x11   : > { %v298_v3 = vadd.f32 %v297_v1, %v296_v0 }
  0x13   : > { %v300_v4 = vadd.f32 %v299_v2, %v298_v3  ;;  %v488_v7 = vpop.eup %487 }
  0x14   : > { %v306_v8 = vmul.f32 32.0, %v488_v7  ;;  %vm310_vm1 = vweird.f32 %v488_v7 }
  0x15   : > { %v302_v5 = vsel %vm301_vm0, %v300_v4, 0.0 }
  0x16   : > { %303 = vadd.xlane.f32.xlu0 %v302_v5  ;;  %v307_v9 = vsub.f32 1.0, %v306_v8 }
  0x18   : > { %v308_v10 = vmul.f32 %v488_v7, %v307_v9 }
  0x1a   : > { %v309_v11 = vadd.f32 %v488_v7, %v308_v10 }
  0x1c   : > { %v311_v12 = vsel %vm310_vm1, %v488_v7, %v309_v11 }
  0x89   : > { %v304_v13 = vpop.xlane.xlu0 %303 }
  0x8a   : > { %v312_v14 = vmul.f32 %v311_v12, %v304_v13 }
  0x8c   : > { %v313_v15 = vsub.f32 %v300_v4, %v312_v14 }
  0x8e   : > { %v314_v16 = vmul.f32 %v313_v15, %v313_v15 }
  0x90   : > { %v315_v17 = vsel %vm301_vm0, %v314_v16, 0.0 }
  0x91   : > { %316 = vadd.xlane.f32.xlu0 %v315_v17 }
 0x104   : > { %v317_v18 = vpop.xlane.xlu0 %316 }
 0x105   : > { %v318_v19 = vmul.f32 %v317_v18, %v311_v12 }
 0x107   : > { %v319_v20 = vadd.f32 1e-12, %v318_v19 }
 0x109   : > { %489 = vrsqrt.f32 %v319_v20  ;;  %vm326_vm3 = vweird.f32 %v319_v20 }
 0x10f   : > { %v490_v21 = vpop.eup %489 }
 0x110   : > { %v321_v22 = vmul.f32 %v490_v21, %v319_v20  ;;  %vm327_vm2 = vweird.f32 %v490_v21 }
 0x111   : > { %vm328_vm4 = vmor %vm326_vm3, %vm327_vm2 }
 0x112   : > { %v322_v23 = vmul.f32 %v490_v21, %v321_v22 }
 0x114   : > { %v323_v24 = vmul.f32 0.5, %v322_v23 }
 0x116   : > { %v324_v25 = vsub.f32 1.5, %v323_v24 }
 0x118   : > { %v325_v26 = vmul.f32 %v490_v21, %v324_v25 }
 0x11a   : > { %v329_v28 = vsel %vm328_vm4, %v490_v21, %v325_v26 }
 0x11b   : > { %v330_v30 = vmul.f32 %v329_v28, %v313_v15 }
 0x11d   : > { %v335_v31 = vmul.f32 %v485_v27, %v330_v30 }
 0x11f   : > { %v340_v32 = vadd.f32 %v486_v29, %v335_v31 }
 0x121   : > { %v341_v33 = vpack.c.bf16 %v340_v32, %v340_v32 }
 0x123   : > { %343 = vst.msk [vmem:[%s295_s13] sm:$0xf] %vm342_vm5, %v341_v33 }
 0x124 PF: > { %s15_s20 = sadd.s32 1, %s513_s20   ;;  %s603_s18 = smov %s509_s19 }
 0x125   : > { %p12_p5 = scmp.ge.s32.totalorder %s15_s20, 4   ;;  %s604_s19 = smov %s606_s21 }
 0x127   :  { %14 = sbr.rel (!%p12_p5) target bundleno = 2 (0x2), region = 76 }

// kernel: _lambda_.7
= control target key start
LH: loop header
LB: loop body
LE: loop exit
PB: predicated region body
PF: predicated region fallthrough
CT: control target
= control target key end

     0   :  { %vm42_vm0 = vcmask 261120   ;;  %vm62_vm1 = vcmask 781312   ;;  %s124_s1 = inlined_call_operand.vmem [shape: bf16[32,96], index: 1, kind: input, shape index: {}]   ;;  %s125_s2 = inlined_call_operand.vmem [shape: f32[1,96], index: 2, kind: input, shape index: {}]   ;;  %s126_s0 = inlined_call_operand.vmem [shape: bf16[16,32], index: 0, kind: input, shape index: {}]   ;;  %s127_s3 = inlined_call_operand.vmem [shape: bf16[16,96], index: 3, kind: output, shape index: {}]  }
   0x1   :  { %v84_v0 = vld [vmem:[%s124_s1 + $0x8] sm:$0xff]  ;;  %v83_v1 = vld [vmem:[%s124_s1] sm:$0xff] }
   0x2   :  { %52 = vmatpush.bf16.msra.mxu0 %v84_v0  ;;  %v82_v2 = vld [vmem:[%s126_s0] sm:$0xff] }
   0x3   :  { %v85_v3 = vld [vmem:[%s125_s2] ss:$0 sm:$0xff] }
   0x6   :  { %53 = vmatpush.bf16.msra.mxu0 %v83_v1 }
   0x9   :  { %81 = vmatmul.msk.bf16.vlgmr.msra.gmra.mxu0 %vm42_vm0, %v82_v2 }
  0x86   :  { %v55_v4 = vpop.f32.mrf.mxu0 }
  0x87   :  { %v56_v5 = vadd.f32 %v85_v3, %v55_v4 }
  0x89   :  { %v60_v6 = vpack.c.bf16 %v56_v5, %v56_v5 }
  0x8b   :  { %63 = vst.msk [vmem:[%s127_s3] sm:$0xf] %vm62_vm1, %v60_v6 }
  0x8e   :  { %v57_v7 = vpop.f32.mrf.mxu0 }
  0x8f   :  { %v58_v8 = vadd.f32 %v85_v3, %v57_v7 }
  0x91   :  { %v61_v9 = vpack.c.bf16 %v58_v8, %v58_v8 }
  0x93   :  { %64 = vst.msk [vmem:[%s127_s3 + $0x4] sm:$0xf] %vm62_vm1, %v61_v9 }

// kernel: _lambda_.8
= control target key start
LH: loop header
LB: loop body
LE: loop exit
PB: predicated region body
PF: predicated region fallthrough
CT: control target
= control target key end

     0   :  { %9 = vsyncpa [#allocation3], 0  ;;  %s1083_s0 = inlined_call_operand.vmem [shape: bf16[2,8,96], index: 0, kind: input, shape index: {}]   ;;  %s1084_s1 = inlined_call_operand.vmem [shape: f32[2,1,8], index: 1, kind: input, shape index: {}]   ;;  %s1085_s2 = inlined_call_operand.hbm [shape: f32[2,4,8,8], index: 2, kind: output, shape index: {0}]   ;;  %s1086_s3 = inlined_call_operand.vmem [shape: bf16[2,8,32], index: 3, kind: output, shape index: {1}]  }
   0x1   :  { %11 = vsyncpa [#allocation3 + $0x1], 0  ;;  %s908_s12 = smov 0   ;;  %s910_s13 = smov 0  }
   0x2   :  { %s912_s14 = smov 0   ;;  %s914_s15 = smov 0  }
   0x3   :  { %s916_s16 = smov 0   ;;  %s918_s17 = smov 0  }
   0x4 LB: > { %s681_s18 = sadd.s32 4294967295, %s871_s17   ;;  %s682_s19 = sadd.s32 4294967294, %s871_s17   ;;  %s871_s17 = sphi %s918_s17, %s17_s17   ;;  %s867_s16 = sphi %s916_s16, %s1093_s16   ;;  %s863_s15 = sphi %s914_s15, %s1092_s15   ;;  %s859_s14 = sphi %s912_s14, %s1091_s14   ;;  %s855_s13 = sphi %s910_s13, %s1090_s13   ;;  %s851_s12 = sphi %s908_s12, %s1089_s12  }
   0x5   : > { %s29_s20 = sadd.s32 1, %s867_s16  ;;  %s92_s21 = sadd.s32 1, %s859_s14 }
   0x6   : > { %p31_p0 = scmp.ge.s32.totalorder %s29_s20, 2  ;;  %p102_p1 = scmp.ne.s32.totalorder %s859_s14, %s855_s13 }
   0x7   : > { %p103_p2 = scmp.eq.s32.totalorder %s681_s18, 1  ;;  %p108_p3 = scmp.ne.s32.totalorder %s855_s13, %s851_s12 }
   0x8   : > { %s1095_s20 = smov (%p31_p0, %s29_s20), 0  ;;  %p109_p5 = scmp.eq.s32.totalorder %s682_s19, 1 }
   0x9   : > { %p948_p4 = por %p103_p2, %p102_p1  ;;  %s87_s23 = ssub.s32 %s867_s16, %s1095_s20 }
   0xa   : > { %p685_p6 = scmp.ge.s32.totalorder %s871_s17, 1  ;;  %p90_p7 = scmp.eq.s32.totalorder %s87_s23, 0 }
   0xb   : > { %p955_p8 = por %p109_p5, %p108_p3  ;;  %p171_p9 = scmp.lt.s32.totalorder %s871_s17, 3 }
   0xc   : > { %s961_s25 = scalar_select %p90_p7, %s859_s14, %s92_s21  }
   0xd   : > { %p172_p10 = pnand %p685_p6, %p171_p9 }
   0xe   : > { %p207_p11 = scmp.lt.s32.totalorder (!%p172_p10), %s863_s15, 1  ;;  %s873_s7 = smov (!%p172_p10), 96  }
   0xf   : > { %175 = sbr.rel (%p172_p10) target bundleno = 1194 (0x4aa), region = 28  ;;  %s874_s8 = smov (!%p172_p10), 88  }
  0x10   : > { %s875_s9 = smov (!%p172_p10), 120   ;;  %s876_s10 = smov (!%p172_p10), 64  }
  0x11   : > { %s877_s11 = smov (!%p172_p10), 80   ;;  %s878_s18 = smov (!%p172_p10), 72  }
  0x12   : > { %s879_s19 = smov (!%p172_p10), 112   ;;  %s880_s21 = smov (!%p172_p10), 104  }
  0x13   : > { %s195_s23 = sand.u32 (!%p172_p10), 1, %s855_s13   ;;  %s882_s4 = smov (!%p172_p10), 40  }
  0x14   : > { %s965_s26 = scalar_select %p207_p11, %s863_s15, 1  ;;  %vm236_vm0 = vcmask 64512   ;;  %vm287_vm1 = vcmask 1043456  }
  0x15   : > { %s686_s28 = sshll.u32 %s195_s23, 5  ;;  %s883_s5 = smov 48  }
  0x16   : > { %s687_s27 = sshll.u32 %s965_s26, 2  ;;  %s216_s6 = scalar_lea.vmem %s1084_s1, %s965_s26 }
  0x17   : > { %s213_s30 = scalar_lea.vmem %s1083_s0, %s687_s27  ;;  %v986_v8 = vld [vmem:[%s216_s6] ss:$0 sm:$0xff]  ;;  %s1004_s29 = scalar_lea.vmem [#allocation2], %s686_s28 }
  0x18   : > { %v226_v0 = vld [vmem:[%s213_s30] sm:$0xf]  ;;  %s881_s30 = smov 56   ;;  %s884_s6 = smov 8  }
  0x19   : > { %v232_v1 = vunpack.c.l.b16 %v226_v0 }
  0x1b   : > { %v977_v2 = vpack.c.b16 %v232_v1, %v232_v1 }
  0x1d   : > { %234 = vrot.lane.b32.xlu0 %v977_v2, %s873_s7  ;;  %306 = vrot.lane.b32.xlu1 %v977_v2, %s874_s8  ;;  %s705_s7 = sshll.u32 %s863_s15, 5  ;;  %s813_s15 = scalar_lea.hbm %s1085_s2, 64 }
  0x1e   : > { %304 = vrot.lane.b32.xlu2 %v977_v2, %s875_s9 }
  0x26   : > { %282 = vrot.lane.b32.xlu2 %v977_v2, %s876_s10  ;;  %s558_s10 = scalar_lea.hbm %s1085_s2, %s705_s7 }
  0x2e   : > { %377 = vrot.lane.b32.xlu2 %v977_v2, %s877_s11  ;;  %s559_s11 = sshll.u32 %s1004_s29, 4  ;;  %s560_s11 = int_to_ptr.vmem [resolvable:$true] %s559_s11 }
  0x36   : > { %448 = vrot.lane.b32.xlu2 %v977_v2, %s878_s18  ;;  %s561_s18 = sshll.u32 %s558_s10, 4  ;;  %s562_s18 = int_to_ptr.hbm [resolvable:$true] %s561_s18 }
  0x3e   : > { %375 = vrot.lane.b32.xlu2 %v977_v2, %s879_s19  ;;  %s538_s19 = scalar_lea.sflag [#allocation3], %s195_s23 }
  0x78   : > { %v305_v7 = vpop.permute.xlu2 %304 }
  0x80   : > { %v283_v16 = vpop.permute.xlu2 %282 }
  0x81   : > { %v289_v17 = vsel %vm287_vm1, %v283_v16, 0 }
  0x82   : > { %298 = vmatpush.bf16.msra.mxu1 %v289_v17 }
  0x88   : > { %v378_v22 = vpop.permute.xlu2 %377 }
  0x89   : > { %v383_v23 = vsel %vm236_vm0, %v378_v22, 0 }
  0x8a   : > { %392 = vmatpush.bf16.xpose.msrb.mxu1 %v383_v23 }
  0x8f   : > { %v235_v3 = vpop.permute.xlu0 %234  ;;  %v307_v5 = vpop.permute.xlu1 %306 }
  0x90   : > { %v241_v4 = vsel %vm236_vm0, %v235_v3, 0  ;;  %v312_v6 = vsel %vm236_vm0, %v307_v5, 0  ;;  %v449_v26 = vpop.permute.xlu2 %448 }
  0x91   : > { %250 = vmatpush.bf16.xpose.msra.mxu0 %v241_v4  ;;  %321 = vmatpush.bf16.xpose.msra.mxu2 %v312_v6  ;;  %v454_v27 = vsel %vm236_vm0, %v449_v26, 0 }
  0x98   : > { %689 = vmatmul.msk.bf16.vlgmr.msra.gmra.mxu0 %vm236_vm0, %v226_v0  ;;  %691 = vmatmul.msk.bf16.vlgmr.msra.gmra.mxu2 %vm236_vm0, %v305_v7  ;;  %v376_v42 = vpop.permute.xlu2 %375 }
  0x99   : > { %463 = vmatpush.bf16.xpose.msrb.mxu0 %v454_v27 }
 0x115   : > { %v252_v9 = vpop.f32.mrf.mxu0 }
 0x116   : > { %v253_v10 = vadd.f32 %v986_v8, %v252_v9 }
 0x118   : > { %v256_v11 = vsel %vm236_vm0, %v253_v10, -inf }
 0x119   : > { %257 = vmax.xlane.f32.xlu0 %v256_v11 }
 0x11b   : > { %v323_v20 = vpop.f32.mrf.mxu2 }
 0x11c   : > { %v324_v21 = vadd.f32 %v986_v8, %v323_v20 }
 0x11d   : > { %v254_v12 = vpop.f32.mrf.mxu0 }
 0x11e   : > { %v327_v24 = vsel %vm236_vm0, %v324_v21, -inf }
 0x11f   : > { %328 = vmax.xlane.f32.xlu2 %v327_v24 }
 0x123   : > { %v325_v25 = vpop.f32.mrf.mxu2 }
 0x137   : > { %354 = vrot.lane.b32.xlu2 %v977_v2, %s881_s30 }
 0x18c   : > { %v258_v13 = vpop.xlane.xlu0 %257 }
 0x18d   : > { %v259_v14 = vsub.f32 %v253_v10, %v258_v13 }
 0x18f   : > { %v260_v15 = vmul.f32 1.442695, %v259_v14 }
 0x191   : > { %777 = vpow2.f32 %v260_v15 }
 0x192   : > { %v329_v43 = vpop.xlane.xlu2 %328 }
 0x193   : > { %v330_v44 = vsub.f32 %v324_v21, %v329_v43 }
 0x195   : > { %v331_v46 = vmul.f32 1.442695, %v330_v44 }
 0x197   : > { %v778_v18 = vpop.eup %777 }
 0x198   : > { %v262_v19 = vsel %vm236_vm0, %v778_v18, 0.0 }
 0x199   : > { %263 = vadd.xlane.f32.xlu1 %v262_v19 }
 0x19a   : > { %v355_v58 = vpop.permute.xlu2 %354 }
 0x19b   : > { %v360_v59 = vsel %vm287_vm1, %v355_v58, 0 }
 0x19c   : > { %369 = vmatpush.bf16.msra.mxu3 %v360_v59 }
 0x1b2   : > { %446 = vrot.lane.b32.xlu1 %v977_v2, %s880_s21  ;;  %s807_s21 = sshra.s32 %s562_s18, 4  ;;  %s808_s21 = int_to_ptr.hbm [resolvable:$true] %s807_s21 }
 0x1b3   : > { %s809_s28 = scalar_lea.hbm %s808_s21, 32  ;;  %p814_p1 = scmp.lt.s32.totalorder %s808_s21, %s1085_s2 }
 0x1b4   : > { %p810_p12 = scmp.ne.s32.totalorder %s808_s21, %s809_s28  ;;  %p815_p2 = scmp.lt.s32.totalorder %s813_s15, %s809_s28 }
 0x1b6   : > { %p811_p13 = pnand %p810_p12, %p948_p4  ;;  %p816_p3 = por %p815_p2, %p814_p1 }
 0x1b8   : > { %p812_p0 = pneg %p811_p13 }
 0x1ba   : > { %p817_p5 = pnand %p816_p3, %p812_p0 }
 0x20c   : > { %v264_v28 = vpop.xlane.xlu1 %263 }
 0x20d   : > { %779 = vrcp.f32 %v264_v28  ;;  %v276_v32 = vand.u32 2147483648, %v264_v28  ;;  %v274_v34 = vand.u32 2147483647, %v264_v28  ;;  %vm270_vm3 = vweird.f32 %v264_v28 }
 0x20e   : > { %781 = vpow2.f32 %v331_v46 }
 0x20f   : > { %v277_v36 = vor.u32 1.1754944e-38, %v276_v32  ;;  %vm275_vm5 = vcmp.eq.f32.partialorder %v274_v34, 8.507059e+37 }
 0x213   : > { %v780_v29 = vpop.eup %779 }
 0x214   : > { %v266_v30 = vmul.f32 %v780_v29, %v264_v28  ;;  %vm271_vm2 = vweird.f32 %v780_v29  ;;  %v782_v51 = vpop.eup %781 }
 0x215   : > { %vm272_vm4 = vmor %vm270_vm3, %vm271_vm2  ;;  %v333_v53 = vsel %vm236_vm0, %v782_v51, 0.0 }
 0x216   : > { %v267_v31 = vsub.f32 1.0, %v266_v30 }
 0x218   : > { %v268_v33 = vmul.f32 %v780_v29, %v267_v31 }
 0x21a   : > { %v269_v35 = vadd.f32 %v780_v29, %v268_v33 }
 0x21c   : > { %v273_v37 = vsel %vm272_vm4, %v780_v29, %v269_v35 }
 0x21d   : > { %v278_v38 = vsel %vm275_vm5, %v277_v36, %v273_v37 }
 0x21e   : > { %v279_v39 = vmul.f32 %v778_v18, %v278_v38 }
 0x220   : > { %280 = vst.msk [vmem:[%s1004_s29] sm:$0xff] %vm236_vm0, %v279_v39  ;;  %v281_v40 = vpack.c.bf16 %v279_v39, %v279_v39 }
 0x222   : > { %690 = vmatmul.msk.bf16.vlgmr.msra.gmra.mxu1 %vm236_vm0, %v281_v40 }
 0x224   : > { %v447_v41 = vpop.permute.xlu1 %446 }
 0x225   : > { %697 = vmatmul.msk.bf16.vlgmr.msrb.gmra.mxu0 %vm236_vm0, %v447_v41 }
 0x232   : > { %694 = vmatmul.msk.bf16.vlgmr.msrb.gmra.mxu1 %vm236_vm0, %v376_v42 }
 0x29f   : > { %v1012_v45 = vpop.f32.mrf.mxu1 }
 0x2a2   : > { %v465_v47 = vpop.f32.mrf.mxu0 }
 0x2a3   : > { %v466_v48 = vadd.f32 %v986_v8, %v465_v47 }
 0x2a5   : > { %v469_v49 = vsel %vm236_vm0, %v466_v48, -inf }
 0x2a6   : > { %470 = vmax.xlane.f32.xlu0 %v469_v49 }
 0x2a7   : > { %v302_v50 = vpop.f32.mrf.mxu1 }
 0x2aa   : > { %v467_v52 = vpop.f32.mrf.mxu0 }
 0x2ae   : > { %334 = vadd.xlane.f32.xlu0 %v333_v53 }
 0x2af   : > { %v394_v54 = vpop.f32.mrf.mxu1 }
 0x2b0   : > { %v395_v55 = vadd.f32 %v986_v8, %v394_v54 }
 0x2b2   : > { %v398_v56 = vsel %vm236_vm0, %v395_v55, -inf }
 0x2b3   : > { %399 = vmax.xlane.f32.xlu1 %v398_v56 }
 0x2b7   : > { %v396_v57 = vpop.f32.mrf.mxu1 }
 0x2cc   : > { %496 = vrot.lane.b32.xlu1 %v977_v2, %s882_s4 }
 0x319   : > { %v471_v60 = vpop.xlane.xlu0 %470 }
 0x31a   : > { %v472_v61 = vsub.f32 %v466_v48, %v471_v60 }
 0x31c   : > { %v473_v62 = vmul.f32 1.442695, %v472_v61 }
 0x31e   : > { %783 = vpow2.f32 %v473_v62 }
 0x321   : > { %v335_v63 = vpop.xlane.xlu0 %334 }
 0x322   : > { %785 = vrcp.f32 %v335_v63  ;;  %v347_v9 = vand.u32 2147483648, %v335_v63  ;;  %v345_v11 = vand.u32 2147483647, %v335_v63  ;;  %vm341_vm7 = vweird.f32 %v335_v63 }
 0x324   : > { %v784_v0 = vpop.eup %783  ;;  %v348_v13 = vor.u32 1.1754944e-38, %v347_v9  ;;  %vm346_vm9 = vcmp.eq.f32.partialorder %v345_v11, 8.507059e+37 }
 0x325   : > { %v475_v1 = vsel %vm236_vm0, %v784_v0, 0.0 }
 0x326   : > { %476 = vadd.xlane.f32.xlu0 %v475_v1  ;;  %v400_v3 = vpop.xlane.xlu1 %399 }
 0x327   : > { %v401_v4 = vsub.f32 %v395_v55, %v400_v3 }
 0x328   : > { %v786_v5 = vpop.eup %785 }
 0x329   : > { %v337_v6 = vmul.f32 %v786_v5, %v335_v63  ;;  %v402_v7 = vmul.f32 1.442695, %v401_v4  ;;  %vm342_vm6 = vweird.f32 %v786_v5 }
 0x32a   : > { %vm343_vm8 = vmor %vm341_vm7, %vm342_vm6 }
 0x32b   : > { %v338_v8 = vsub.f32 1.0, %v337_v6  ;;  %787 = vpow2.f32 %v402_v7 }
 0x32d   : > { %v339_v10 = vmul.f32 %v786_v5, %v338_v8 }
 0x32f   : > { %v340_v12 = vadd.f32 %v786_v5, %v339_v10 }
 0x331   : > { %v788_v14 = vpop.eup %787  ;;  %v344_v15 = vsel %vm343_vm8, %v786_v5, %v340_v12 }
 0x332   : > { %v404_v16 = vsel %vm236_vm0, %v788_v14, 0.0  ;;  %v349_v17 = vsel %vm346_vm9, %v348_v13, %v344_v15 }
 0x333   : > { %405 = vadd.xlane.f32.xlu0 %v404_v16  ;;  %v350_v18 = vmul.f32 %v782_v51, %v349_v17 }
 0x335   : > { %692 = vst.msk [vmem:[%s1004_s29 + $0x8] sm:$0xff] %vm236_vm0, %v350_v18  ;;  %v353_v19 = vpack.c.bf16 %v350_v18, %v350_v18 }
 0x337   : > { %693 = vmatmul.msk.bf16.vlgmr.msra.gmra.mxu3 %vm236_vm0, %v353_v19 }
 0x33e   : > { %v497_v20 = vpop.permute.xlu1 %496 }
 0x33f   : > { %v502_v21 = vsel %vm287_vm1, %v497_v20, 0 }
 0x340   : > { %511 = vmatpush.bf16.msrb.mxu2 %v502_v21 }
 0x347   : > { %425 = vrot.lane.b32.xlu0 %v977_v2, %s883_s5 }
 0x399   : > { %v477_v22 = vpop.xlane.xlu0 %476 }
 0x39a   : > { %789 = vrcp.f32 %v477_v22  ;;  %v489_v26 = vand.u32 2147483648, %v477_v22  ;;  %v487_v28 = vand.u32 2147483647, %v477_v22  ;;  %vm483_vm11 = vweird.f32 %v477_v22 }
 0x39c   : > { %v490_v2 = vor.u32 1.1754944e-38, %v489_v26  ;;  %vm488_vm13 = vcmp.eq.f32.partialorder %v487_v28, 8.507059e+37 }
 0x3a0   : > { %v790_v23 = vpop.eup %789 }
 0x3a1   : > { %v479_v24 = vmul.f32 %v790_v23, %v477_v22  ;;  %vm484_vm10 = vweird.f32 %v790_v23 }
 0x3a2   : > { %vm485_vm12 = vmor %vm483_vm11, %vm484_vm10 }
 0x3a3   : > { %v480_v25 = vsub.f32 1.0, %v479_v24 }
 0x3a5   : > { %v481_v27 = vmul.f32 %v790_v23, %v480_v25 }
 0x3a6   : > { %v406_v29 = vpop.xlane.xlu0 %405 }
 0x3a7   : > { %v482_v30 = vadd.f32 %v790_v23, %v481_v27  ;;  %791 = vrcp.f32 %v406_v29  ;;  %v418_v38 = vand.u32 2147483648, %v406_v29  ;;  %v416_v40 = vand.u32 2147483647, %v406_v29 }
 0x3a8   : > { %vm412_vm15 = vweird.f32 %v406_v29 }
 0x3a9   : > { %v486_v31 = vsel %vm485_vm12, %v790_v23, %v482_v30  ;;  %v419_v42 = vor.u32 1.1754944e-38, %v418_v38  ;;  %vm417_vm3 = vcmp.eq.f32.partialorder %v416_v40, 8.507059e+37 }
 0x3aa   : > { %v491_v32 = vsel %vm488_vm13, %v490_v2, %v486_v31 }
 0x3ab   : > { %v492_v33 = vmul.f32 %v784_v0, %v491_v32 }
 0x3ad   : > { %v792_v34 = vpop.eup %791  ;;  %698 = vst.msk [vmem:[%s1004_s29 + $0x18] sm:$0xff] %vm236_vm0, %v492_v33  ;;  %v495_v35 = vpack.c.bf16 %v492_v33, %v492_v33 }
 0x3ae   : > { %v408_v36 = vmul.f32 %v792_v34, %v406_v29  ;;  %vm413_vm14 = vweird.f32 %v792_v34 }
 0x3af   : > { %699 = vmatmul.msk.bf16.vlgmr.msrb.gmra.mxu2 %vm236_vm0, %v495_v35  ;;  %vm414_vm2 = vmor %vm412_vm15, %vm413_vm14 }
 0x3b0   : > { %v409_v37 = vsub.f32 1.0, %v408_v36 }
 0x3b2   : > { %v410_v39 = vmul.f32 %v792_v34, %v409_v37 }
 0x3b4   : > { %v411_v41 = vadd.f32 %v792_v34, %v410_v39 }
 0x3b6   : > { %v415_v43 = vsel %vm414_vm2, %v792_v34, %v411_v41 }
 0x3b7   : > { %v420_v44 = vsel %vm417_vm3, %v419_v42, %v415_v43 }
 0x3b8   : > { %v421_v46 = vmul.f32 %v788_v14, %v420_v44 }
 0x3b9   : > { %v426_v47 = vpop.permute.xlu0 %425 }
 0x3ba   : > { %v371_v48 = vpop.f32.mrf.mxu3  ;;  %v431_v49 = vsel %vm287_vm1, %v426_v47, 0  ;;  %695 = vst.msk [vmem:[%s1004_s29 + $0x10] sm:$0xff] %vm236_vm0, %v421_v46  ;;  %v424_v50 = vpack.c.bf16 %v421_v46, %v421_v46 }
 0x3bb   : > { %518 = vrot.lane.b32.xlu0 %v371_v48, %s884_s6  ;;  %440 = vmatpush.bf16.msrb.mxu3 %v431_v49 }
 0x3be   : > { %696 = vmatmul.msk.bf16.vlgmr.msrb.gmra.mxu3 %vm236_vm0, %v424_v50 }
 0x3c2   : > { %v373_v51 = vpop.f32.mrf.mxu3 }
 0x3c3   : > { %820 = shalt.err (!%p817_p5)
}
 0x3c4   : > { %s885_s23 = smov 128   ;;  %s886_s29 = smov 24   ;;  %vm530_vm1 = vcmask 130048   ;;  %vm532_vm4 = vcmask 195584   ;;  %vm535_vm5 = vcmask 257024  }
 0x3c5   : > { %706 = dma.vmem_to_hbm [thread:$0]  (%p948_p4), %s560_s11, 512, %s562_s18, %s538_s19, %s885_s23, %s885_s23, %s884_s6  }
 0x3c6   : > { %s887_s7 = smov 16   ;;  %s224_s9 = scalar_lea.vmem %s1086_s3, %s687_s27 }
 0x42d   : > { %v519_v56 = vpop.permute.xlu0 %518 }
 0x42e   : > { %v529_v58 = vsel %vm236_vm0, %v1012_v45, %v519_v56 }
 0x432   : > { %v513_v52 = vpop.f32.mrf.mxu2 }
 0x433   : > { %526 = vrot.lane.b32.xlu1 %v513_v52, %s886_s29 }
 0x43a   : > { %v515_v53 = vpop.f32.mrf.mxu2 }
 0x441   : > { %v442_v54 = vpop.f32.mrf.mxu3 }
 0x442   : > { %522 = vrot.lane.b32.xlu2 %v442_v54, %s887_s7 }
 0x449   : > { %v444_v55 = vpop.f32.mrf.mxu3 }
 0x49c   : > { %v523_v57 = vpop.permute.xlu2 %522 }
 0x49d   : > { %v531_v59 = vsel %vm530_vm1, %v529_v58, %v523_v57 }
 0x4a5   : > { %v527_v60 = vpop.permute.xlu1 %526 }
 0x4a6   : > { %v533_v61 = vsel %vm532_vm4, %v531_v59, %v527_v60 }
 0x4a7   : > { %v534_v62 = vpack.c.bf16 %v533_v61, %v533_v61 }
 0x4a9   : > { %536 = vst.msk [vmem:[%s224_s9] sm:$0xf] %vm535_vm5, %v534_v62 }
 0x4aa PF: > { %p712_p4 = scmp.ge.s32.totalorder %s871_s17, 2  ;;  %s579_s10 = sand.u32 1, %s851_s12  }
 0x4ab   : > { %s580_s11 = scalar_lea.sflag [#allocation3], %s579_s10 }
 0x4ac   : > { %p709_p6 = pnand %p712_p4, %p955_p8 }
 0x4ae   : > { %p710_p7 = pneg %p709_p6 }
 0x4b0   : > { %846 = dma.done.wait (%p710_p7), %s580_s11, 512  }
 0x4b1   : > { %848 = vsyncadd (%p710_p7), %s580_s11, 4294966784  ;;  %s17_s17 = sadd.s32 1, %s871_s17   ;;  %s1089_s12 = smov %s855_s13 }
 0x4b2   : > { %p14_p9 = scmp.ge.s32.totalorder %s17_s17, 4   ;;  %s1090_s13 = smov %s859_s14 }
 0x4b3   : > { %s1091_s14 = smov %s961_s25  ;;  %s1092_s15 = smov %s867_s16 }
 0x4b4   : > { %s1093_s16 = smov %s1095_s20  ;;  %16 = sbr.rel (!%p14_p9) target bundleno = 4 (0x4), region = 81 }
 0x4b9   :  { %596 = vsyncpa [#allocation3], 1 }
 0x4ba   :  { %598 = vsyncpa [#allocation3 + $0x1], 1 }

// kernel: _lambda_.11
= control target key start
LH: loop header
LB: loop body
LE: loop exit
PB: predicated region body
PF: predicated region fallthrough
CT: control target
= control target key end

     0   :  { %s151_s0 = inlined_call_operand.vmem [shape: f32[2,32], index: 0, kind: input, shape index: {}]   ;;  %s152_s1 = inlined_call_operand.vmem [shape: bf16[32,32], index: 1, kind: input, shape index: {}]   ;;  %s153_s2 = inlined_call_operand.vmem [shape: f32[1,32], index: 2, kind: input, shape index: {}]   ;;  %s154_s3 = inlined_call_operand.hbm [shape: f32[2,32], index: 3, kind: output, shape index: {}]  }
   0x1   :  { %v84_v0 = vld [vmem:[%s152_s1 + $0x8] sm:$0xff] }
   0x2   :  { %8 = vsyncpa [#allocation3], 0  ;;  %48 = vmatpush.bf16.msra.mxu0 %v84_v0  ;;  %v83_v1 = vld [vmem:[%s152_s1] sm:$0xff]  ;;  %vm38_vm0 = vcmask 261120   ;;  %s115_s20 = smov [#allocation2]   ;;  %s65_s1 = sshll.u32 %s154_s3, 4  ;;  %s66_s1 = int_to_ptr.hbm [resolvable:$true] %s65_s1 }
   0x3   :  { %v16_v2 = vld [vmem:[%s151_s0] sm:$0x3]  ;;  %s63_s21 = sshll.u32 %s115_s20, 4  ;;  %vm56_vm1 = vcmask 254976   ;;  %s64_s21 = int_to_ptr.vmem [resolvable:$true] %s63_s21 }
   0x4   :  { %v17_v3 = vpack.c.bf16 %v16_v2, %v16_v2  ;;  %v86_v4 = vld [vmem:[%s153_s2] ss:$0 sm:$0xff] }
   0x6   :  { %49 = vmatpush.bf16.msra.mxu0 %v83_v1 }
   0x9   :  { %82 = vmatmul.msk.bf16.vlgmr.msra.gmra.mxu0 %vm38_vm0, %v17_v3 }
  0x86   :  { %v51_v5 = vpop.f32.mrf.mxu0 }
  0x87   :  { %v52_v6 = vadd.f32 %v86_v4, %v51_v5 }
  0x89   :  { %87 = vtanh.f32 %v52_v6 }
  0x8e   :  { %v53_v7 = vpop.f32.mrf.mxu0 }
  0x8f   :  { %v88_v8 = vpop.eup %87 }
  0x90   :  { %57 = vst.msk [vmem:[#allocation2] sm:$0x3] %vm56_vm1, %v88_v8 }
  0x91   :  { %68 = dma.vmem_to_hbm [thread:$0]  %s64_s21, 32, %s66_s1, [#allocation3]  }
  0x92   :  { %113 = dma.done.wait [#allocation3], 32  }
  0x93   :  { %114 = vsyncadd [#allocation3], 4294967264 }
  0x94   :  { %73 = vsyncpa [#allocation3], 1 }

// kernel: _lambda_.10
= control target key start
LH: loop header
LB: loop body
LE: loop exit
PB: predicated region body
PF: predicated region fallthrough
CT: control target
= control target key end

     0   :  { %vm54_vm0 = vcmask 261120   ;;  %vm197_vm9 = vcmask 523264   ;;  %s450_s1 = inlined_call_operand.vmem [shape: bf16[32,64], index: 1, kind: input, shape index: {}]   ;;  %s451_s2 = inlined_call_operand.vmem [shape: f32[1,64], index: 2, kind: input, shape index: {}]   ;;  %s452_s0 = inlined_call_operand.vmem [shape: bf16[16,32], index: 0, kind: input, shape index: {}]   ;;  %s453_s4 = inlined_call_operand.vmem [shape: f32[1,32], index: 4, kind: input, shape index: {}]   ;;  %s454_s3 = inlined_call_operand.vmem [shape: bf16[64,32], index: 3, kind: input, shape index: {}]   ;;  %s455_s5 = inlined_call_operand.vmem [shape: f32[1,32], index: 5, kind: input, shape index: {}]   ;;  %s456_s6 = inlined_call_operand.vmem [shape: f32[1,32], index: 6, kind: input, shape index: {}]   ;;  %s457_s7 = inlined_call_operand.vmem [shape: f32[16,32], index: 7, kind: output, shape index: {}]  }
   0x1   :  { %v322_v0 = vld [vmem:[%s450_s1 + $0x8] sm:$0xff]  ;;  %v321_v1 = vld [vmem:[%s450_s1] sm:$0xff]  ;;  %v326_v22 = vld [vmem:[%s454_s3 + $0x18] sm:$0xff] }
   0x2   :  { %64 = vmatpush.bf16.msra.mxu0 %v322_v0  ;;  %v320_v2 = vld [vmem:[%s452_s0] sm:$0xff]  ;;  %205 = vmatpush.bf16.msra.mxu1 %v326_v22  ;;  %v325_v30 = vld [vmem:[%s454_s3 + $0x10] sm:$0xff]  ;;  %v324_v38 = vld [vmem:[%s454_s3 + $0x8] sm:$0xff] }
   0x3   :  { %v328_v3 = vld [vmem:[%s451_s2] ss:$0 sm:$0xff] }
   0x4   :  { %v323_v44 = vld [vmem:[%s454_s3] sm:$0xff] }
   0x6   :  { %65 = vmatpush.bf16.msra.mxu0 %v321_v1  ;;  %206 = vmatpush.bf16.msra.mxu1 %v325_v30  ;;  %v329_v30 = vld [vmem:[%s453_s4] ss:$0 sm:$0xff] }
   0x9   :  { %300 = vmatmul.msk.bf16.vlgmr.msra.gmra.mxu0 %vm54_vm0, %v320_v2 }
   0xa   :  { %207 = vmatpush.bf16.msra.mxu1 %v324_v38 }
   0xe   :  { %208 = vmatpush.bf16.msra.mxu1 %v323_v44 }
  0x86   :  { %v67_v4 = vpop.f32.mrf.mxu0 }
  0x87   :  { %v396_v5 = vadd.f32 %v328_v3, %v67_v4 }
  0x89   :  { %v399_v6 = vmul.f32 0.70710677, %v396_v5 }
  0x8b   :  { %v76_v7 = vmul.f32 %v399_v6, %v399_v6 }
  0x8d   :  { %v77_v8 = vmin.f32 %v76_v7, 16.0 }
  0x8e   :  { %v69_v9 = vpop.f32.mrf.mxu0 }
  0x8f   :  { %v78_v10 = vmul.f32 2.1237322e-06, %v77_v8  ;;  %v89_v11 = vmul.f32 3.8918573e-05, %v77_v8  ;;  %v403_v12 = vadd.f32 %v328_v3, %v69_v9 }
  0x91   :  { %v79_v13 = vadd.f32 0.00028619796, %v78_v10  ;;  %v90_v14 = vadd.f32 0.001143296, %v89_v11  ;;  %v406_v15 = vmul.f32 0.70710677, %v403_v12 }
  0x93   :  { %v91_v16 = vmul.f32 %v90_v14, %v77_v8  ;;  %v116_v17 = vmul.f32 %v406_v15, %v406_v15  ;;  %v80_v18 = vmul.f32 %v79_v13, %v77_v8 }
  0x95   :  { %v92_v19 = vadd.f32 0.014752088, %v91_v16  ;;  %v117_v20 = vmin.f32 %v116_v17, 16.0  ;;  %v81_v25 = vadd.f32 0.0036580483, %v80_v18 }
  0x97   :  { %v93_v21 = vmul.f32 %v92_v19, %v77_v8  ;;  %v118_v23 = vmul.f32 2.1237322e-06, %v117_v20  ;;  %v129_v24 = vmul.f32 3.8918573e-05, %v117_v20  ;;  %v82_v33 = vmul.f32 %v81_v25, %v77_v8 }
  0x98   :  { %v73_v25 = vmul.f32 0.5, %v403_v12 }
  0x99   :  { %v94_v26 = vadd.f32 0.112945676, %v93_v21  ;;  %v119_v27 = vadd.f32 0.00028619796, %v118_v23  ;;  %v130_v28 = vadd.f32 0.001143296, %v129_v24 }
  0x9a   :  { %v83_v40 = vadd.f32 0.05243302, %v82_v33  ;;  %v72_v24 = vmul.f32 0.5, %v396_v5 }
  0x9b   :  { %v95_v29 = vmul.f32 %v94_v26, %v77_v8  ;;  %v120_v31 = vmul.f32 %v119_v27, %v117_v20  ;;  %v131_v32 = vmul.f32 %v130_v28, %v117_v20 }
  0x9c   :  { %v84_v46 = vmul.f32 %v83_v40, %v77_v8 }
  0x9d   :  { %v96_v34 = vadd.f32 0.4994258, %v95_v29  ;;  %v121_v35 = vadd.f32 0.0036580483, %v120_v31  ;;  %v132_v36 = vadd.f32 0.014752088, %v131_v32 }
  0x9e   :  { %v85_v51 = vadd.f32 0.18741608, %v84_v46 }
  0x9f   :  { %v97_v37 = vmul.f32 %v96_v34, %v77_v8  ;;  %v133_v39 = vmul.f32 %v132_v36, %v117_v20  ;;  %v122_v42 = vmul.f32 %v121_v35, %v117_v20 }
  0xa0   :  { %v86_v56 = vmul.f32 %v85_v51, %v77_v8 }
  0xa1   :  { %v98_v41 = vadd.f32 1.0, %v97_v37  ;;  %v134_v43 = vadd.f32 0.112945676, %v133_v39  ;;  %v123_v47 = vadd.f32 0.05243302, %v122_v42  ;;  %v342_v39 = vmov 32.0  }
  0xa2   :  { %v87_v62 = vadd.f32 1.1283791, %v86_v56 }
  0xa3   :  { %332 = vrcp.f32 %v98_v41  ;;  %v135_v45 = vmul.f32 %v134_v43, %v117_v20  ;;  %v124_v53 = vmul.f32 %v123_v47, %v117_v20  ;;  %v110_v58 = vand.u32 2147483648, %v98_v41 }
  0xa4   :  { %v108_v60 = vand.u32 2147483647, %v98_v41  ;;  %vm104_vm2 = vweird.f32 %v98_v41  ;;  %v88_v7 = vmul.f32 %v87_v62, %v399_v6 }
  0xa5   :  { %v136_v48 = vadd.f32 0.4994258, %v135_v45  ;;  %v125_v59 = vadd.f32 0.18741608, %v124_v53  ;;  %v111_v1 = vor.u32 1.1754944e-38, %v110_v58 }
  0xa6   :  { %vm109_vm4 = vcmp.eq.f32.partialorder %v108_v60, 8.507059e+37 }
  0xa7   :  { %v137_v49 = vmul.f32 %v136_v48, %v117_v20  ;;  %v126_v2 = vmul.f32 %v125_v59, %v117_v20 }
  0xa9   :  { %v333_v50 = vpop.eup %332  ;;  %v138_v54 = vadd.f32 1.0, %v137_v49  ;;  %v127_v8 = vadd.f32 1.1283791, %v126_v2 }
  0xaa   :  { %v100_v52 = vmul.f32 %v333_v50, %v98_v41  ;;  %vm105_vm1 = vweird.f32 %v333_v50 }
  0xab   :  { %334 = vrcp.f32 %v138_v54  ;;  %vm106_vm3 = vmor %vm104_vm2, %vm105_vm1  ;;  %v150_v10 = vand.u32 2147483648, %v138_v54  ;;  %v148_v14 = vand.u32 2147483647, %v138_v54  ;;  %vm144_vm6 = vweird.f32 %v138_v54 }
  0xac   :  { %v101_v55 = vsub.f32 1.0, %v100_v52  ;;  %v128_v19 = vmul.f32 %v127_v8, %v406_v15  ;;  %v27_v15 = vld [vmem:[%s452_s0] sm:$0xff]   ;;  %336 = vrcp.f32 %v342_v39 }
  0xad   :  { %v151_v17 = vor.u32 1.1754944e-38, %v150_v10  ;;  %vm149_vm8 = vcmp.eq.f32.partialorder %v148_v14, 8.507059e+37  ;;  %v215_v31 = vunpack.c.l.bf16 %v27_v15  ;;  %v216_v34 = vunpack.c.h.bf16 %v27_v15 }
  0xae   :  { %v102_v57 = vmul.f32 %v333_v50, %v101_v55 }
  0xb0   :  { %v103_v61 = vadd.f32 %v333_v50, %v102_v57 }
  0xb1   :  { %v335_v63 = vpop.eup %334 }
  0xb2   :  { %v107_v0 = vsel %vm106_vm3, %v333_v50, %v103_v61  ;;  %v140_v3 = vmul.f32 %v335_v63, %v138_v54  ;;  %vm145_vm5 = vweird.f32 %v335_v63  ;;  %v337_v40 = vpop.eup %336 }
  0xb3   :  { %v112_v4 = vsel %vm109_vm4, %v111_v1, %v107_v0  ;;  %vm146_vm7 = vmor %vm144_vm6, %vm145_vm5  ;;  %v226_v41 = vmul.f32 32.0, %v337_v40  ;;  %vm230_vm10 = vweird.f32 %v337_v40 }
  0xb4   :  { %v141_v9 = vsub.f32 1.0, %v140_v3  ;;  %v113_v11 = vmul.f32 %v112_v4, %v88_v7 }
  0xb5   :  { %v227_v42 = vsub.f32 1.0, %v226_v41 }
  0xb6   :  { %v142_v13 = vmul.f32 %v335_v63, %v141_v9  ;;  %v301_v18 = vclamps-f32 %v113_v11, 1.0  ;;  %v330_v9 = vld [vmem:[%s455_s5] ss:$0 sm:$0xff] }
  0xb7   :  { %v228_v43 = vmul.f32 %v337_v40, %v227_v42  ;;  %v331_v11 = vld [vmem:[%s456_s6] ss:$0 sm:$0xff] }
  0xb8   :  { %v143_v16 = vadd.f32 %v335_v63, %v142_v13  ;;  %v156_v23 = vadd.f32 1.0, %v301_v18 }
  0xb9   :  { %v229_v44 = vadd.f32 %v337_v40, %v228_v43 }
  0xba   :  { %v147_v20 = vsel %vm146_vm7, %v335_v63, %v143_v16  ;;  %v158_v27 = vmul.f32 %v156_v23, %v72_v24 }
  0xbb   :  { %v152_v21 = vsel %vm149_vm8, %v151_v17, %v147_v20  ;;  %v231_v45 = vsel %vm230_vm10, %v337_v40, %v229_v44 }
  0xbc   :  { %v153_v22 = vmul.f32 %v152_v21, %v128_v19 }
  0xbe   :  { %v302_v6 = vclamps-f32 %v153_v22, 1.0 }
  0xc0   :  { %v157_v26 = vadd.f32 1.0, %v302_v6 }
  0xc2   :  { %v159_v28 = vmul.f32 %v157_v26, %v73_v25 }
  0xc4   :  { %v160_v29 = vpack.c.bf16 %v159_v28, %v158_v27 }
  0xc6   :  { %319 = vmatmul.msk.bf16.vlgmr.msra.gmra.mxu1 %vm197_vm9, %v160_v29 }
 0x143   :  { %v210_v32 = vpop.f32.mrf.mxu1 }
 0x144   :  { %v211_v33 = vadd.f32 %v329_v30, %v210_v32 }
 0x146   :  { %v217_v5 = vadd.f32 %v215_v31, %v211_v33 }
 0x148   :  { %v219_v12 = vsel %vm54_vm0, %v217_v5, 0.0 }
 0x149   :  { %220 = vadd.xlane.f32.xlu0 %v219_v12 }
 0x14b   :  { %v212_v35 = vpop.f32.mrf.mxu1 }
 0x14c   :  { %v213_v36 = vadd.f32 %v329_v30, %v212_v35 }
 0x14e   :  { %v218_v37 = vadd.f32 %v216_v34, %v213_v36 }
 0x150   :  { %v222_v38 = vsel %vm54_vm0, %v218_v37, 0.0 }
 0x151   :  { %223 = vadd.xlane.f32.xlu0 %v222_v38 }
 0x1bc   :  { %v221_v46 = vpop.xlane.xlu0 %220 }
 0x1bd   :  { %v232_v47 = vmul.f32 %v231_v45, %v221_v46 }
 0x1bf   :  { %v234_v48 = vsub.f32 %v217_v5, %v232_v47 }
 0x1c1   :  { %v236_v49 = vmul.f32 %v234_v48, %v234_v48 }
 0x1c3   :  { %v238_v50 = vsel %vm54_vm0, %v236_v49, 0.0 }
 0x1c4   :  { %239 = vadd.xlane.f32.xlu1 %v238_v50  ;;  %v224_v51 = vpop.xlane.xlu0 %223 }
 0x1c5   :  { %v233_v52 = vmul.f32 %v231_v45, %v224_v51 }
 0x1c7   :  { %v235_v53 = vsub.f32 %v218_v37, %v233_v52 }
 0x1c9   :  { %v237_v54 = vmul.f32 %v235_v53, %v235_v53 }
 0x1cb   :  { %v241_v55 = vsel %vm54_vm0, %v237_v54, 0.0 }
 0x1cc   :  { %242 = vadd.xlane.f32.xlu1 %v241_v55 }
 0x237   :  { %v240_v56 = vpop.xlane.xlu1 %239 }
 0x238   :  { %v244_v57 = vmul.f32 %v240_v56, %v231_v45 }
 0x23a   :  { %v246_v58 = vadd.f32 1e-12, %v244_v57 }
 0x23c   :  { %338 = vrsqrt.f32 %v246_v58  ;;  %vm254_vm12 = vweird.f32 %v246_v58 }
 0x23f   :  { %v243_v59 = vpop.xlane.xlu1 %242 }
 0x240   :  { %v245_v60 = vmul.f32 %v243_v59, %v231_v45 }
 0x242   :  { %v339_v61 = vpop.eup %338  ;;  %v247_v62 = vadd.f32 1e-12, %v245_v60 }
 0x243   :  { %v249_v63 = vmul.f32 %v339_v61, %v246_v58  ;;  %vm255_vm11 = vweird.f32 %v339_v61 }
 0x244   :  { %340 = vrsqrt.f32 %v247_v62  ;;  %vm256_vm13 = vmor %vm254_vm12, %vm255_vm11  ;;  %vm264_vm15 = vweird.f32 %v247_v62 }
 0x245   :  { %v250_v0 = vmul.f32 %v339_v61, %v249_v63 }
 0x247   :  { %v251_v1 = vmul.f32 0.5, %v250_v0 }
 0x249   :  { %v252_v2 = vsub.f32 1.5, %v251_v1 }
 0x24a   :  { %v341_v3 = vpop.eup %340 }
 0x24b   :  { %v253_v4 = vmul.f32 %v339_v61, %v252_v2  ;;  %v259_v7 = vmul.f32 %v341_v3, %v247_v62  ;;  %vm265_vm14 = vweird.f32 %v341_v3 }
 0x24c   :  { %vm266_vm1 = vmor %vm264_vm15, %vm265_vm14 }
 0x24d   :  { %v257_v8 = vsel %vm256_vm13, %v339_v61, %v253_v4  ;;  %v260_v10 = vmul.f32 %v341_v3, %v259_v7 }
 0x24e   :  { %v268_v13 = vmul.f32 %v257_v8, %v234_v48 }
 0x24f   :  { %v261_v14 = vmul.f32 0.5, %v260_v10 }
 0x250   :  { %v274_v16 = vmul.f32 %v330_v9, %v268_v13 }
 0x251   :  { %v262_v17 = vsub.f32 1.5, %v261_v14 }
 0x252   :  { %v280_v18 = vadd.f32 %v331_v11, %v274_v16 }
 0x253   :  { %v263_v19 = vmul.f32 %v341_v3, %v262_v17 }
 0x254   :  { %282 = vst.msk [vmem:[%s457_s7] sm:$0xff] %vm54_vm0, %v280_v18 }
 0x255   :  { %v267_v20 = vsel %vm266_vm1, %v341_v3, %v263_v19 }
 0x256   :  { %v269_v21 = vmul.f32 %v267_v20, %v235_v53 }
 0x258   :  { %v275_v22 = vmul.f32 %v330_v9, %v269_v21 }
 0x25a   :  { %v281_v23 = vadd.f32 %v331_v11, %v275_v22 }
 0x25c   :  { %283 = vst.msk [vmem:[%s457_s7 + $0x8] sm:$0xff] %vm54_vm0, %v281_v23 }

</bundles_post_ra>
